<compile_context>
chip_gen: v6e
topology: v6e:2x2x1
jax: 0.10.0
libtpu: 0.0.40
codegen_flags: <defaults>
</compile_context>

<pallas_src>
import functools

import numpy as np
import jax
import jax.numpy as jnp
from jax.experimental import pallas as pl
from jax.experimental.pallas import tpu as pltpu

S = 32       # rows reserved per image in the 2D activation slabs (28 real + 4 pad)
TRAIL = 16   # trailing zero-pad rows on the input slab


# ---------------------------------------------------------------------------
# The single fused kernel.
#   x_ref    : (B*S + TRAIL, 28)  zero-padded images, row = b*S + y   (f32)
#   m1_ref   : (140, 250)  conv1 as one wide-K banded lane-mixing matrix (bf16)
#   b1_ref   : (1, 240)    conv1 bias tiled over x                      (f32)
#   m2_ref   : (1200, 160) conv2 wide-K banded matrix                   (bf16)
#   b2_ref   : (1, 140)    conv2 bias tiled over x                      (f32)
#   w1_ref   : (560, 50)   fc1 weight with NCHW flatten folded in       (bf16)
#   fc1b_ref : (1, 50)                                                  (f32)
#   fc2w_ref : (50, L)     fc2.weight.T                                 (bf16)
#   fc2b_ref : (1, L)                                                   (f32)
#   o_ref    : (B, L)      log_softmax output                           (f32)
# ---------------------------------------------------------------------------
def _net_kernel(B, L, x_ref, m1_ref, b1_ref, m2_ref, b2_ref, w1_ref,
                fc1b_ref, fc2w_ref, fc2b_ref, o_ref):
    # Slab row counts.  Only rows at b*S + k are "valid"; the garbage rows in
    # between images are never read into valid outputs (band structure of the
    # matrices + all shifted reads staying inside each image's 28 real rows).
    n_r2 = (B - 1) * S + 16   # rows after pool2 (valid a2 rows: b*S + 4*py)
    n_c2 = n_r2 + 8           # rows of conv2 slab (valid: b*S + 2*y2)
    n_r1 = n_c2 + 8           # rows after pool1 (valid: b*S + 2*Y)
    n_c1 = n_r1 + 8           # rows of conv1 slab (valid: b*S + y)

    x = x_ref[...]                                              # (B*S+16, 28)

    # ---- conv1: ONE wide-K matmul (K = 5*28 = 140) -------------------------
    # x5[r, ky*28 + l] = x[r + ky, l];  c1[r, x*10+co] = conv1 pre-bias.
    x5 = jnp.concatenate([x[ky:ky + n_c1, :] for ky in range(5)],
                         axis=1).astype(jnp.bfloat16)           # (n_c1, 140)
    c1 = jnp.dot(x5, m1_ref[...], preferred_element_type=jnp.float32)

    # ---- 2x2 maxpool (sliding) + bias (hoisted after max) + relu, f32 VPU --
    r1 = jnp.maximum(c1[0:n_r1, :], c1[1:n_r1 + 1, :])          # row max
    a1 = jnp.maximum(r1[:, 0:240], r1[:, 10:250])               # lane (x) max
    a1 = jnp.maximum(a1 + b1_ref[...], 0.0)                     # (n_r1, 240)
    # valid: a1[b*S + 2Y, 20X + c] == relu(pool(conv1)+b1)[b, c, Y, X]

    # ---- conv2: ONE wide-K matmul (K = 5*240 = 1200) ------------------------
    a15 = jnp.concatenate([a1[2 * ky:2 * ky + n_c2, :] for ky in range(5)],
                          axis=1).astype(jnp.bfloat16)          # (n_c2, 1200)
    c2 = jnp.dot(a15, m2_ref[...], preferred_element_type=jnp.float32)

    # ---- 2x2 maxpool + bias + relu ------------------------------------------
    r2 = jnp.maximum(c2[0:n_r2, :], c2[2:n_r2 + 2, :])
    a2 = jnp.maximum(r2[:, 0:140], r2[:, 20:160])
    a2 = jnp.maximum(a2 + b2_ref[...], 0.0)                     # (n_r2, 140)
    # valid: a2[b*S + 4*py, 40*px + co] == relu(pool(conv2)+b2)[b, co, py, px]

    # ---- fc1: compact the B*4 valid rows, single (B, 560) @ (560, 50) -------
    # compact[b, py*140 + l] = a2[b*S + 4*py, l]  (NCHW flatten folded into W1)
    compact = jnp.concatenate(
        [jnp.concatenate([a2[b * S + 4 * py: b * S + 4 * py + 1, :]
                          for py in range(4)], axis=1)
         for b in range(B)], axis=0).astype(jnp.bfloat16)       # (B, 560)
    h = jnp.dot(compact, w1_ref[...], preferred_element_type=jnp.float32)
    h = jnp.maximum(h + fc1b_ref[...], 0.0)                     # (B, 50)

    # ---- fc2 + log_softmax ---------------------------------------------------
    logits = jnp.dot(h.astype(jnp.bfloat16), fc2w_ref[...],
                     preferred_element_type=jnp.float32) + fc2b_ref[...]
    m = jnp.max(logits, axis=-1, keepdims=True)
    sh = logits - m
    lse = jnp.log(jnp.sum(jnp.exp(sh), axis=-1, keepdims=True))
    o_ref[...] = sh - lse


# ---------------------------------------------------------------------------
# One-time parameter preparation (all weight re-layouts hoisted out of forward).
# ---------------------------------------------------------------------------
def prepare_params(params):
    w1, b1 = params["conv1_w"], params["conv1_b"]       # (10,1,5,5), (10,)
    w2, b2 = params["conv2_w"], params["conv2_b"]       # (20,10,5,5), (20,)
    fc1w, fc1b = params["fc1_w"], params["fc1_b"]       # (50,320), (50,)
    fc2w, fc2b = params["fc2_w"], params["fc2_b"]       # (L,50), (L,)
    L = fc2w.shape[0]

    # conv1 -> banded matrix, flattened to one wide-K operand:
    #   M1[ky*28 + (x+kx), x*10 + co] = w1[co, 0, ky, kx]
    ky, x, kx, co = jnp.meshgrid(jnp.arange(5), jnp.arange(24),
                                 jnp.arange(5), jnp.arange(10), indexing="ij")
    M1 = jnp.zeros((5, 28, 250), jnp.float32).at[
        ky, x + kx, x * 10 + co].set(w1[co, 0, ky, kx].astype(jnp.float32))
    M1 = M1.reshape(140, 250).astype(jnp.bfloat16)

    # conv2 -> banded matrix, flattened (K = 5*240 = 1200):
    #   M2[ky*240 + (x2+kx)*20 + c, x2*20 + co] = w2[co, c, ky, kx]
    ky, x2, kx, c, co = jnp.meshgrid(jnp.arange(5), jnp.arange(8),
                                     jnp.arange(5), jnp.arange(10),
                                     jnp.arange(20), indexing="ij")
    M2 = jnp.zeros((5, 240, 160), jnp.float32).at[
        ky, (x2 + kx) * 20 + c, x2 * 20 + co].set(
            w2[co, c, ky, kx].astype(jnp.float32))
    M2 = M2.reshape(1200, 160).astype(jnp.bfloat16)

    # fc1 with the PyTorch NCHW flatten (co*16 + py*4 + px) folded in:
    #   W1[py*140 + 40*px + co, j] = fc1w[j, co*16 + py*4 + px]
    py, px, co, j = jnp.meshgrid(jnp.arange(4), jnp.arange(4),
                                 jnp.arange(20), jnp.arange(50), indexing="ij")
    W1 = jnp.zeros((4, 140, 50), jnp.float32).at[
        py, 40 * px + co, j].set(
            fc1w[j, co * 16 + py * 4 + px].astype(jnp.float32))
    W1 = W1.reshape(560, 50).astype(jnp.bfloat16)

    return {
        "M1": M1,
        "b1t": jnp.tile(b1, 24).reshape(1, 240).astype(jnp.float32),
        "M2": M2,
        "b2t": jnp.tile(b2, 7).reshape(1, 140).astype(jnp.float32),
        "W1": W1,
        "fc1b": fc1b.reshape(1, 50).astype(jnp.float32),
        "fc2wT": fc2w.T.astype(jnp.bfloat16),
        "fc2b": fc2b.reshape(1, L).astype(jnp.float32),
    }


# ---------------------------------------------------------------------------
# Forward pass: one pallas_call, whole-array VMEM blocks, grid=().
# TODO(synk): for large batch, tile a "parallel" image grid axis with
# weight index_maps returning block 0 (VMEM-resident weights); at B=2 the
# per-step grid overhead would only hurt.
# ---------------------------------------------------------------------------
@jax.jit
def net_forward(prep, x):
    B = x.shape[0]
    L = prep["fc2wT"].shape[1]

    img = x.reshape(B, 28, 28).astype(jnp.float32)
    # S rows per image (28 real + S-28 zero pad) + TRAIL trailing pad rows
    x2d = jnp.pad(img, ((0, 0), (0, S - 28), (0, 0))).reshape(B * S, 28)
    x2d = jnp.pad(x2d, ((0, TRAIL), (0, 0)))

    operands = (x2d, prep["M1"], prep["b1t"], prep["M2"], prep["b2t"],
                prep["W1"], prep["fc1b"], prep["fc2wT"], prep["fc2b"])

    # Advisory cost estimate (overhead-bound custom call; helps XLA schedule).
    n_r2 = (B - 1) * S + 16
    n_c2 = n_r2 + 8
    n_c1 = n_c2 + 16
    flops = 2 * (n_c1 * 140 * 250 + n_c2 * 1200 * 160
                 + B * 560 * 50 + B * 50 * L)
    bytes_accessed = sum(int(a.size) * a.dtype.itemsize for a in operands) \
        + B * L * 4

    vmem = pltpu.MemorySpace.VMEM
    kernel = functools.partial(_net_kernel, B, L)
    out = pl.pallas_call(
        kernel,
        out_shape=jax.ShapeDtypeStruct((B, L), jnp.float32),
        in_specs=[pl.BlockSpec(memory_space=vmem) for _ in operands],
        out_specs=pl.BlockSpec(memory_space=vmem),
        cost_estimate=pl.CostEstimate(flops=flops,
                                      transcendentals=B * (L + 1),
                                      bytes_accessed=bytes_accessed),
    )(*operands)
    return out


# ---------------------------------------------------------------------------
# Pure-JAX reference of the PyTorch forward (f32, HIGHEST precision).
# ---------------------------------------------------------------------------
def reference_forward(params, x):
    hi = jax.lax.Precision.HIGHEST
    B = x.shape[0]
    y = jax.lax.conv_general_dilated(
        x.astype(jnp.float32), params["conv1_w"].astype(jnp.float32),
        (1, 1), "VALID", dimension_numbers=("NCHW", "OIHW", "NCHW"),
        precision=hi) + params["conv1_b"].reshape(1, -1, 1, 1)
    y = jax.lax.reduce_window(y, -jnp.inf, jax.lax.max,
                              (1, 1, 2, 2), (1, 1, 2, 2), "VALID")
    y = jnp.maximum(y, 0.0)
    y = jax.lax.conv_general_dilated(
        y, params["conv2_w"].astype(jnp.float32),
        (1, 1), "VALID", dimension_numbers=("NCHW", "OIHW", "NCHW"),
        precision=hi) + params["conv2_b"].reshape(1, -1, 1, 1)
    y = jax.lax.reduce_window(y, -jnp.inf, jax.lax.max,
                              (1, 1, 2, 2), (1, 1, 2, 2), "VALID")
    y = jnp.maximum(y, 0.0)
    y = y.reshape(B, -1)                               # NCHW flatten -> 320
    y = jnp.maximum(jnp.dot(y, params["fc1_w"].T, precision=hi)
                    + params["fc1_b"], 0.0)
    y = jnp.dot(y, params["fc2_w"].T, precision=hi) + params["fc2_b"]
    return jax.nn.log_softmax(y, axis=-1)


# ---------------------------------------------------------------------------
# Deterministic parameter init (shapes from the PyTorch Net.__init__).
# ---------------------------------------------------------------------------
def init_params(key, latent_dim):
    ks = jax.random.split(key, 8)

    def rnd(k, shape, fan_in):
        return jax.random.normal(k, shape, jnp.float32) / jnp.sqrt(float(fan_in))

    return {
        "conv1_w": rnd(ks[0], (10, 1, 5, 5), 25),
        "conv1_b": rnd(ks[1], (10,), 25),
        "conv2_w": rnd(ks[2], (20, 10, 5, 5), 250),
        "conv2_b": rnd(ks[3], (20,), 250),
        "fc1_w": rnd(ks[4], (50, 320), 320),
        "fc1_b": rnd(ks[5], (50,), 320),
        "fc2_w": rnd(ks[6], (latent_dim, 50), 50),
        "fc2_b": rnd(ks[7], (latent_dim,), 50),
    }


if __name__ == "__main__":
    key = jax.random.PRNGKey(0)
    k_param, k_x = jax.random.split(key)

    B, latent_dim = 2, 10
    params = init_params(k_param, latent_dim)
    prep = prepare_params(params)      # one-time weight re-layout (hoisted)

    x = jax.random.normal(k_x, (B, 1, 28, 28), jnp.float32)

    out = net_forward(prep, x)
    jax.block_until_ready(out)

    assert out.shape == (B, latent_dim)
    assert bool(jnp.all(jnp.isfinite(out)))

    # Correctness vs. f32 reference (kernel uses bf16 MXU operands with f32
    # accumulation, so allow a small absolute tolerance).
    ref = reference_forward(params, x)
    np.testing.assert_allclose(np.asarray(out), np.asarray(ref),
                               atol=1e-1, rtol=1e-1)

    # NOTE: nn.Dropout2d (conv2_drop) is constructed but never called in
    # forward(), so there is nothing to translate for it.
    print("KERNEL_OK")
</pallas_src>

<mosaic_0001>
module attributes {stable_mosaic.version = 11 : i64} {
  func.func @_net_kernel(%arg0: memref<80x28xf32, #tpu.memory_space<vmem>>, %arg1: memref<140x250xbf16, #tpu.memory_space<vmem>>, %arg2: memref<1x240xf32, #tpu.memory_space<vmem>>, %arg3: memref<1200x160xbf16, #tpu.memory_space<vmem>>, %arg4: memref<1x140xf32, #tpu.memory_space<vmem>>, %arg5: memref<560x50xbf16, #tpu.memory_space<vmem>>, %arg6: memref<1x50xf32, #tpu.memory_space<vmem>>, %arg7: memref<50x10xbf16, #tpu.memory_space<vmem>>, %arg8: memref<1x10xf32, #tpu.memory_space<vmem>>, %arg9: memref<2x10xf32, #tpu.memory_space<vmem>>) attributes {dimension_semantics = [], scalar_prefetch = 0 : i64, scratch_operands = 0 : i64, tpu.core_type = #tpu.core_type<tc>} {
    %c0 = arith.constant 0 : index
    %c0_0 = arith.constant 0 : index
    %0 = vector.load %arg0[%c0, %c0_0] : memref<80x28xf32, #tpu.memory_space<vmem>>, vector<80x28xf32>
    %1 = vector.extract_strided_slice %0 {offsets = [0, 0], sizes = [72, 28], strides = [1, 1]} : vector<80x28xf32> to vector<72x28xf32>
    %2 = vector.extract_strided_slice %0 {offsets = [1, 0], sizes = [72, 28], strides = [1, 1]} : vector<80x28xf32> to vector<72x28xf32>
    %3 = vector.extract_strided_slice %0 {offsets = [2, 0], sizes = [72, 28], strides = [1, 1]} : vector<80x28xf32> to vector<72x28xf32>
    %4 = vector.extract_strided_slice %0 {offsets = [3, 0], sizes = [72, 28], strides = [1, 1]} : vector<80x28xf32> to vector<72x28xf32>
    %5 = vector.extract_strided_slice %0 {offsets = [4, 0], sizes = [72, 28], strides = [1, 1]} : vector<80x28xf32> to vector<72x28xf32>
    %6 = tpu.concatenate %1, %2, %3, %4, %5 in 1 : vector<72x28xf32>, vector<72x28xf32>, vector<72x28xf32>, vector<72x28xf32>, vector<72x28xf32> -> vector<72x140xf32>
    %7 = arith.truncf %6 : vector<72x140xf32> to vector<72x140xbf16>
    %c0_1 = arith.constant 0 : index
    %c0_2 = arith.constant 0 : index
    %8 = vector.load %arg1[%c0_1, %c0_2] : memref<140x250xbf16, #tpu.memory_space<vmem>>, vector<140x250xbf16>
    %cst = arith.constant dense<0.000000e+00> : vector<72x250xf32>
    %9 = tpu.matmul %7, %8, %cst {dimension_numbers = #tpu.dot_dimension_numbers<[1], [0], [0], [1], [0, 0, 1, 1], [], []>} : vector<72x140xbf16>, vector<140x250xbf16>, vector<72x250xf32> -> vector<72x250xf32>
    %10 = vector.extract_strided_slice %9 {offsets = [0, 0], sizes = [64, 250], strides = [1, 1]} : vector<72x250xf32> to vector<64x250xf32>
    %11 = vector.extract_strided_slice %9 {offsets = [1, 0], sizes = [64, 250], strides = [1, 1]} : vector<72x250xf32> to vector<64x250xf32>
    %12 = arith.maximumf %10, %11 : vector<64x250xf32>
    %13 = vector.extract_strided_slice %12 {offsets = [0, 0], sizes = [64, 240], strides = [1, 1]} : vector<64x250xf32> to vector<64x240xf32>
    %14 = vector.extract_strided_slice %12 {offsets = [0, 10], sizes = [64, 240], strides = [1, 1]} : vector<64x250xf32> to vector<64x240xf32>
    %15 = arith.maximumf %13, %14 : vector<64x240xf32>
    %c0_3 = arith.constant 0 : index
    %c0_4 = arith.constant 0 : index
    %16 = vector.load %arg2[%c0_3, %c0_4] : memref<1x240xf32, #tpu.memory_space<vmem>>, vector<1x240xf32>
    %17 = vector.broadcast %16 : vector<1x240xf32> to vector<64x240xf32>
    %18 = arith.addf %15, %17 : vector<64x240xf32>
    %cst_5 = arith.constant 0.000000e+00 : f32
    %19 = vector.broadcast %cst_5 : f32 to vector<64x240xf32>
    %20 = arith.maximumf %18, %19 : vector<64x240xf32>
    %21 = vector.extract_strided_slice %20 {offsets = [0, 0], sizes = [56, 240], strides = [1, 1]} : vector<64x240xf32> to vector<56x240xf32>
    %22 = vector.extract_strided_slice %20 {offsets = [2, 0], sizes = [56, 240], strides = [1, 1]} : vector<64x240xf32> to vector<56x240xf32>
    %23 = vector.extract_strided_slice %20 {offsets = [4, 0], sizes = [56, 240], strides = [1, 1]} : vector<64x240xf32> to vector<56x240xf32>
    %24 = vector.extract_strided_slice %20 {offsets = [6, 0], sizes = [56, 240], strides = [1, 1]} : vector<64x240xf32> to vector<56x240xf32>
    %25 = vector.extract_strided_slice %20 {offsets = [8, 0], sizes = [56, 240], strides = [1, 1]} : vector<64x240xf32> to vector<56x240xf32>
    %26 = tpu.concatenate %21, %22, %23, %24, %25 in 1 : vector<56x240xf32>, vector<56x240xf32>, vector<56x240xf32>, vector<56x240xf32>, vector<56x240xf32> -> vector<56x1200xf32>
    %27 = arith.truncf %26 : vector<56x1200xf32> to vector<56x1200xbf16>
    %c0_6 = arith.constant 0 : index
    %c0_7 = arith.constant 0 : index
    %28 = vector.load %arg3[%c0_6, %c0_7] : memref<1200x160xbf16, #tpu.memory_space<vmem>>, vector<1200x160xbf16>
    %cst_8 = arith.constant dense<0.000000e+00> : vector<56x160xf32>
    %29 = tpu.matmul %27, %28, %cst_8 {dimension_numbers = #tpu.dot_dimension_numbers<[1], [0], [0], [1], [0, 0, 1, 1], [], []>} : vector<56x1200xbf16>, vector<1200x160xbf16>, vector<56x160xf32> -> vector<56x160xf32>
    %30 = vector.extract_strided_slice %29 {offsets = [0, 0], sizes = [48, 160], strides = [1, 1]} : vector<56x160xf32> to vector<48x160xf32>
    %31 = vector.extract_strided_slice %29 {offsets = [2, 0], sizes = [48, 160], strides = [1, 1]} : vector<56x160xf32> to vector<48x160xf32>
    %32 = arith.maximumf %30, %31 : vector<48x160xf32>
    %33 = vector.extract_strided_slice %32 {offsets = [0, 0], sizes = [48, 140], strides = [1, 1]} : vector<48x160xf32> to vector<48x140xf32>
    %34 = vector.extract_strided_slice %32 {offsets = [0, 20], sizes = [48, 140], strides = [1, 1]} : vector<48x160xf32> to vector<48x140xf32>
    %35 = arith.maximumf %33, %34 : vector<48x140xf32>
    %c0_9 = arith.constant 0 : index
    %c0_10 = arith.constant 0 : index
    %36 = vector.load %arg4[%c0_9, %c0_10] : memref<1x140xf32, #tpu.memory_space<vmem>>, vector<1x140xf32>
    %37 = vector.broadcast %36 : vector<1x140xf32> to vector<48x140xf32>
    %38 = arith.addf %35, %37 : vector<48x140xf32>
    %cst_11 = arith.constant 0.000000e+00 : f32
    %39 = vector.broadcast %cst_11 : f32 to vector<48x140xf32>
    %40 = arith.maximumf %38, %39 : vector<48x140xf32>
    %41 = vector.extract_strided_slice %40 {offsets = [0, 0], sizes = [1, 140], strides = [1, 1]} : vector<48x140xf32> to vector<1x140xf32>
    %42 = vector.extract_strided_slice %40 {offsets = [4, 0], sizes = [1, 140], strides = [1, 1]} : vector<48x140xf32> to vector<1x140xf32>
    %43 = vector.extract_strided_slice %40 {offsets = [8, 0], sizes = [1, 140], strides = [1, 1]} : vector<48x140xf32> to vector<1x140xf32>
    %44 = vector.extract_strided_slice %40 {offsets = [12, 0], sizes = [1, 140], strides = [1, 1]} : vector<48x140xf32> to vector<1x140xf32>
    %45 = tpu.concatenate %41, %42, %43, %44 in 1 : vector<1x140xf32>, vector<1x140xf32>, vector<1x140xf32>, vector<1x140xf32> -> vector<1x560xf32>
    %46 = vector.extract_strided_slice %40 {offsets = [32, 0], sizes = [1, 140], strides = [1, 1]} : vector<48x140xf32> to vector<1x140xf32>
    %47 = vector.extract_strided_slice %40 {offsets = [36, 0], sizes = [1, 140], strides = [1, 1]} : vector<48x140xf32> to vector<1x140xf32>
    %48 = vector.extract_strided_slice %40 {offsets = [40, 0], sizes = [1, 140], strides = [1, 1]} : vector<48x140xf32> to vector<1x140xf32>
    %49 = vector.extract_strided_slice %40 {offsets = [44, 0], sizes = [1, 140], strides = [1, 1]} : vector<48x140xf32> to vector<1x140xf32>
    %50 = tpu.concatenate %46, %47, %48, %49 in 1 : vector<1x140xf32>, vector<1x140xf32>, vector<1x140xf32>, vector<1x140xf32> -> vector<1x560xf32>
    %51 = tpu.concatenate %45, %50 in 0 : vector<1x560xf32>, vector<1x560xf32> -> vector<2x560xf32>
    %52 = arith.truncf %51 : vector<2x560xf32> to vector<2x560xbf16>
    %c0_12 = arith.constant 0 : index
    %c0_13 = arith.constant 0 : index
    %53 = vector.load %arg5[%c0_12, %c0_13] : memref<560x50xbf16, #tpu.memory_space<vmem>>, vector<560x50xbf16>
    %cst_14 = arith.constant dense<0.000000e+00> : vector<2x50xf32>
    %54 = tpu.matmul %52, %53, %cst_14 {dimension_numbers = #tpu.dot_dimension_numbers<[1], [0], [0], [1], [0, 0, 1, 1], [], []>} : vector<2x560xbf16>, vector<560x50xbf16>, vector<2x50xf32> -> vector<2x50xf32>
    %c0_15 = arith.constant 0 : index
    %c0_16 = arith.constant 0 : index
    %55 = vector.load %arg6[%c0_15, %c0_16] : memref<1x50xf32, #tpu.memory_space<vmem>>, vector<1x50xf32>
    %56 = vector.broadcast %55 : vector<1x50xf32> to vector<2x50xf32>
    %57 = arith.addf %54, %56 : vector<2x50xf32>
    %cst_17 = arith.constant 0.000000e+00 : f32
    %58 = vector.broadcast %cst_17 : f32 to vector<2x50xf32>
    %59 = arith.maximumf %57, %58 : vector<2x50xf32>
    %60 = arith.truncf %59 : vector<2x50xf32> to vector<2x50xbf16>
    %c0_18 = arith.constant 0 : index
    %c0_19 = arith.constant 0 : index
    %61 = vector.load %arg7[%c0_18, %c0_19] : memref<50x10xbf16, #tpu.memory_space<vmem>>, vector<50x10xbf16>
    %cst_20 = arith.constant dense<0.000000e+00> : vector<2x10xf32>
    %62 = tpu.matmul %60, %61, %cst_20 {dimension_numbers = #tpu.dot_dimension_numbers<[1], [0], [0], [1], [0, 0, 1, 1], [], []>} : vector<2x50xbf16>, vector<50x10xbf16>, vector<2x10xf32> -> vector<2x10xf32>
    %c0_21 = arith.constant 0 : index
    %c0_22 = arith.constant 0 : index
    %63 = vector.load %arg8[%c0_21, %c0_22] : memref<1x10xf32, #tpu.memory_space<vmem>>, vector<1x10xf32>
    %64 = vector.broadcast %63 : vector<1x10xf32> to vector<2x10xf32>
    %65 = arith.addf %62, %64 : vector<2x10xf32>
    %cst_23 = arith.constant dense<0xFF800000> : vector<2xf32>
    %66 = vector.multi_reduction <maximumf>, %65, %cst_23 [1] : vector<2x10xf32> to vector<2xf32>
    %67 = vector.shape_cast %66 : vector<2xf32> to vector<2x1xf32>
    %68 = vector.broadcast %67 : vector<2x1xf32> to vector<2x10xf32>
    %69 = arith.subf %65, %68 : vector<2x10xf32>
    %70 = math.exp %69 : vector<2x10xf32>
    %cst_24 = arith.constant dense<0.000000e+00> : vector<2xf32>
    %71 = vector.multi_reduction <add>, %70, %cst_24 [1] : vector<2x10xf32> to vector<2xf32>
    %72 = vector.shape_cast %71 : vector<2xf32> to vector<2x1xf32>
    %73 = math.log %72 : vector<2x1xf32>
    %74 = vector.broadcast %73 : vector<2x1xf32> to vector<2x10xf32>
    %75 = arith.subf %69, %74 : vector<2x10xf32>
    %c0_25 = arith.constant 0 : index
    %c0_26 = arith.constant 0 : index
    %76 = vector.load %arg9[%c0_25, %c0_26] : memref<2x10xf32, #tpu.memory_space<vmem>>, vector<2x10xf32>
    tpu.vector_store %arg9[%c0_25, %c0_26], %75 {strides = array<i32>} : memref<2x10xf32, #tpu.memory_space<vmem>>, vector<2x10xf32>,
    return
  }
}

</mosaic_0001>

<bundles_post_ra>
// kernel: net_forward.1
= control target key start
LH: loop header
LB: loop body
LE: loop exit
PB: predicated region body
PF: predicated region fallthrough
CT: control target
= control target key end

     0   :  { %vm54_vm0 = vcmask 1046528   ;;  %vm148_vm1 = vcmask 1044480   ;;  %vm101_vm2 = vcmask 1045504   ;;  %vm195_vm3 = vcmask 1043456   ;;  %s3968_s21 = smov 28   ;;  %s3969_s26 = smov 84   ;;  %s5618_s0 = inlined_call_operand.vmem [shape: f32[80,28], index: 0, kind: input, shape index: {}]   ;;  %s5619_s1 = inlined_call_operand.vmem [shape: bf16[140,250], index: 1, kind: input, shape index: {}]   ;;  %s5620_s2 = inlined_call_operand.vmem [shape: f32[1,240], index: 2, kind: input, shape index: {}]   ;;  %s5621_s3 = inlined_call_operand.vmem [shape: bf16[1200,160], index: 3, kind: input, shape index: {}]   ;;  %s5622_s4 = inlined_call_operand.vmem [shape: f32[1,140], index: 4, kind: input, shape index: {}]   ;;  %s5623_s5 = inlined_call_operand.vmem [shape: bf16[560,50], index: 5, kind: input, shape index: {}]   ;;  %s5624_s6 = inlined_call_operand.vmem [shape: f32[1,50], index: 6, kind: input, shape index: {}]   ;;  %s5625_s7 = inlined_call_operand.vmem [shape: bf16[50,10], index: 7, kind: input, shape index: {}]   ;;  %s5626_s8 = inlined_call_operand.vmem [shape: f32[1,10], index: 8, kind: input, shape index: {}]   ;;  %s5627_s9 = inlined_call_operand.hbm [shape: f32[2,10], index: 9, kind: output, shape index: {}]  }
   0x1   :  { %v4036_v0 = vld [vmem:[%s5618_s0] sm:$0xff]  ;;  %v4041_v1 = vld [vmem:[%s5618_s0 + $0x8] sm:$0xff]  ;;  %v4046_v2 = vld [vmem:[%s5618_s0 + $0x10] sm:$0xff]  ;;  %s3970_s14 = smov 56   ;;  %s3971_s15 = smov 112  }
   0x2   :  { %v55_v3 = vrot.slane %v4036_v0, 1  ;;  %v56_v4 = vrot.slane %v4041_v1, 1  ;;  %v58_v5 = vrot.slane %v4046_v2, 1  ;;  %v149_v6 = vrot.slane %v4036_v0, 3  ;;  %v4062_v14 = vld [vmem:[%s5618_s0 + $0x18] sm:$0xff]  ;;  %v4069_v18 = vld [vmem:[%s5618_s0 + $0x20] sm:$0xff] }
   0x3   :  { %v150_v7 = vrot.slane %v4041_v1, 3  ;;  %v152_v8 = vrot.slane %v4046_v2, 3  ;;  %v102_v9 = vrot.slane %v4036_v0, 2  ;;  %v103_v12 = vrot.slane %v4041_v1, 2  ;;  %v3651_v23 = vld [vmem:[%s5619_s1 + $0x74] ss:$8 sps:$4 sm:$0xff]  }
   0x4   :  { %v57_v10 = vsel %vm54_vm0, %v55_v3, %v56_v4  ;;  %v59_v11 = vsel %vm54_vm0, %v56_v4, %v58_v5  ;;  %v105_v13 = vrot.slane %v4046_v2, 2  ;;  %v196_v22 = vrot.slane %v4036_v0, 4  ;;  %v4084_v28 = vld [vmem:[%s5618_s0 + $0x28] sm:$0xff]  ;;  %v3653_v29 = vld [vmem:[%s5619_s1 + $0x70] ss:$8 sps:$4 sm:$0xff]   ;;  %420 = vmatprep.subr.bf16.mxu0 %v3651_v23 }
   0x5   :  { %v3421_v15 = vpack.i.bf16 %v59_v11, %v57_v10  ;;  %v151_v16 = vsel %vm148_vm1, %v149_v6, %v150_v7  ;;  %v153_v17 = vsel %vm148_vm1, %v150_v7, %v152_v8  ;;  %v104_v20 = vsel %vm101_vm2, %v102_v9, %v103_v12  ;;  %421 = vmatpush1.bf16.msra.mxu0 %v3653_v29  ;;  %v3654_v38 = vld [vmem:[%s5619_s1 + $0x64] ss:$8 sps:$4 sm:$0xff]   ;;  %v3656_v39 = vld [vmem:[%s5619_s1 + $0x60] ss:$8 sps:$4 sm:$0xff]   ;;  %v4110_v44 = vld [vmem:[%s5618_s0 + $0x30] sm:$0xff] }
   0x6   :  { %v3431_v19 = vpack.i.bf16 %v153_v17, %v151_v16  ;;  %v106_v21 = vsel %vm101_vm2, %v103_v12, %v105_v13  ;;  %v197_v25 = vrot.slane %v4041_v1, 4  ;;  %v199_v26 = vrot.slane %v4046_v2, 4  ;;  %v3657_v45 = vld [vmem:[%s5619_s1 + $0x54] ss:$8 sps:$4 sm:$0xff]   ;;  %422 = vmatprep.subr.bf16.mxu0 %v3654_v38  ;;  %v3659_v56 = vld [vmem:[%s5619_s1 + $0x50] ss:$8 sps:$4 sm:$0xff]  }
   0x7   :  { %3422 = vrot.lane.b32.xlu0 %v3421_v15, %s3968_s21  ;;  %v3426_v24 = vpack.i.bf16 %v106_v21, %v104_v20  ;;  %v60_v27 = vrot.slane %v4062_v14, 1  ;;  %v62_v30 = vrot.slane %v4069_v18, 1  ;;  %v107_v31 = vrot.slane %v4062_v14, 2  ;;  %v3660_v59 = vld [vmem:[%s5619_s1 + $0x44] ss:$8 sps:$4 sm:$0xff]   ;;  %v4144_v7 = vld [vmem:[%s5618_s0 + $0x38] sm:$0xff] }
   0x8   :  { %3432 = vrot.lane.b32.xlu1 %v3431_v19, %s3969_s26  ;;  %v109_v32 = vrot.slane %v4069_v18, 2  ;;  %v154_v33 = vrot.slane %v4062_v14, 3  ;;  %v198_v34 = vsel %vm195_vm3, %v196_v22, %v197_v25  ;;  %v200_v35 = vsel %vm195_vm3, %v197_v25, %v199_v26  ;;  %v4151_v10 = vld [vmem:[%s5618_s0 + $0x40] sm:$0xff]  ;;  %v3663_v12 = vld [vmem:[%s5619_s1 + $0x34] ss:$8 sps:$4 sm:$0xff]  }
   0x9   :  { %v61_v36 = vsel %vm54_vm0, %v58_v5, %v60_v27  ;;  %v156_v37 = vrot.slane %v4069_v18, 3  ;;  %v3436_v40 = vpack.i.bf16 %v200_v35, %v198_v34  ;;  %v63_v41 = vsel %vm54_vm0, %v60_v27, %v62_v30  ;;  %423 = vmatpush1.bf16.msra.mxu0 %v3656_v39  ;;  %v3662_v11 = vld [vmem:[%s5619_s1 + $0x40] ss:$8 sps:$4 sm:$0xff]   ;;  %v3665_v21 = vld [vmem:[%s5619_s1 + $0x30] ss:$8 sps:$4 sm:$0xff]  }
   0xa   :  { %v108_v42 = vsel %vm101_vm2, %v105_v13, %v107_v31  ;;  %v110_v43 = vsel %vm101_vm2, %v107_v31, %v109_v32  ;;  %v3441_v46 = vpack.i.bf16 %v63_v41, %v61_v36  ;;  %v155_v48 = vsel %vm148_vm1, %v152_v8, %v154_v33  ;;  %424 = vmatprep.subr.bf16.mxu0 %v3657_v45  ;;  %v3666_v22 = vld [vmem:[%s5619_s1 + $0x24] ss:$8 sps:$4 sm:$0xff]   ;;  %v3669_v39 = vld [vmem:[%s5619_s1 + $0x14] ss:$8 sps:$4 sm:$0xff]  }
   0xb   :  { %3427 = vrot.lane.b32.xlu0 %v3426_v24, %s3970_s14  ;;  %v3446_v47 = vpack.i.bf16 %v110_v43, %v108_v42  ;;  %v157_v49 = vsel %vm148_vm1, %v154_v33, %v156_v37  ;;  %v201_v50 = vrot.slane %v4062_v14, 4  ;;  %v203_v51 = vrot.slane %v4069_v18, 4  ;;  %v43_v41 = vld [vmem:[%s5618_s0 + $0x48] sm:$0xff]  ;;  %v3671_v42 = vld [vmem:[%s5619_s1 + $0x10] ss:$8 sps:$4 sm:$0xff]  }
   0xc   :  { %3437 = vrot.lane.b32.xlu1 %v3436_v40, %s3971_s15  ;;  %v64_v52 = vrot.slane %v4084_v28, 1  ;;  %v66_v53 = vrot.slane %v4110_v44, 1  ;;  %v111_v54 = vrot.slane %v4084_v28, 2  ;;  %v113_v55 = vrot.slane %v4110_v44, 2 }
   0xd   :  { %v202_v57 = vsel %vm195_vm3, %v199_v26, %v201_v50  ;;  %v204_v58 = vsel %vm195_vm3, %v201_v50, %v203_v51  ;;  %v3451_v60 = vpack.i.bf16 %v157_v49, %v155_v48  ;;  %v158_v62 = vrot.slane %v4084_v28, 3  ;;  %425 = vmatpush1.bf16.msra.mxu0 %v3659_v56 }
   0xe   :  { %v65_v61 = vsel %vm54_vm0, %v62_v30, %v64_v52  ;;  %v160_v63 = vrot.slane %v4110_v44, 3  ;;  %v3456_v3 = vpack.i.bf16 %v204_v58, %v202_v57  ;;  %v67_v4 = vsel %vm54_vm0, %v64_v52, %v66_v53  ;;  %426 = vmatprep.subr.bf16.mxu0 %v3660_v59  ;;  %v3668_v30 = vld [vmem:[%s5619_s1 + $0x20] ss:$8 sps:$4 sm:$0xff]  }
   0xf   :  { %3442 = vrot.lane.b32.xlu0 %v3441_v46, %s3968_s21  ;;  %v112_v5 = vsel %vm101_vm2, %v109_v32, %v111_v54  ;;  %v114_v6 = vsel %vm101_vm2, %v111_v54, %v113_v55  ;;  %v205_v8 = vrot.slane %v4084_v28, 4  ;;  %v207_v9 = vrot.slane %v4110_v44, 4  ;;  %v3675_v54 = vld [vmem:[%s5619_s1 + $0x84] ss:$8 sps:$4 sm:$0x3f]  }
  0x10   :  { %3447 = vrot.lane.b32.xlu1 %v3446_v47, %s3970_s14  ;;  %v3461_v13 = vpack.i.bf16 %v67_v4, %v65_v61  ;;  %v3466_v15 = vpack.i.bf16 %v114_v6, %v112_v5  ;;  %v159_v16 = vsel %vm148_vm1, %v156_v37, %v158_v62  ;;  %v161_v17 = vsel %vm148_vm1, %v158_v62, %v160_v63  ;;  %v3672_v47 = vld [vmem:[%s5619_s1 + $0x4] ss:$8 sps:$4 sm:$0xff]  }
  0x11   :  { %v68_v19 = vrot.slane %v4144_v7, 1  ;;  %v70_v20 = vrot.slane %v4151_v10, 1  ;;  %v206_v23 = vsel %vm195_vm3, %v203_v51, %v205_v8  ;;  %v208_v24 = vsel %vm195_vm3, %v205_v8, %v207_v9  ;;  %427 = vmatpush1.bf16.msra.mxu0 %v3662_v11  ;;  %v3674_v51 = vld [vmem:[%s5619_s1] ss:$8 sps:$4 sm:$0xff]  }
  0x12   :  { %v115_v25 = vrot.slane %v4144_v7, 2  ;;  %v117_v26 = vrot.slane %v4151_v10, 2  ;;  %428 = vmatprep.subr.bf16.mxu0 %v3663_v12  ;;  %v3471_v27 = vpack.i.bf16 %v161_v17, %v159_v16  ;;  %v162_v29 = vrot.slane %v4144_v7, 3 }
  0x13   :  { %3452 = vrot.lane.b32.xlu0 %v3451_v60, %s3969_s26  ;;  %v3476_v31 = vpack.i.bf16 %v208_v24, %v206_v23  ;;  %v69_v32 = vsel %vm54_vm0, %v66_v53, %v68_v19  ;;  %v71_v33 = vsel %vm54_vm0, %v68_v19, %v70_v20  ;;  %v164_v34 = vrot.slane %v4151_v10, 3 }
  0x14   :  { %3457 = vrot.lane.b32.xlu1 %v3456_v3, %s3971_s15  ;;  %v116_v35 = vsel %vm101_vm2, %v113_v55, %v115_v25  ;;  %v118_v36 = vsel %vm101_vm2, %v115_v25, %v117_v26  ;;  %v209_v37 = vrot.slane %v4144_v7, 4  ;;  %v211_v38 = vrot.slane %v4151_v10, 4  ;;  %v3677_v55 = vld [vmem:[%s5619_s1 + $0x80] ss:$8 sps:$4 sm:$0x3f]  }
  0x15   :  { %429 = vmatpush1.bf16.msra.mxu0 %v3665_v21  ;;  %v3481_v40 = vpack.i.bf16 %v71_v33, %v69_v32  ;;  %v3486_v43 = vpack.i.bf16 %v118_v36, %v116_v35  ;;  %v163_v45 = vsel %vm148_vm1, %v160_v63, %v162_v29  ;;  %v165_v46 = vsel %vm148_vm1, %v162_v29, %v164_v34 }
  0x16   :  { %430 = vmatprep.subr.bf16.mxu0 %v3666_v22  ;;  %v210_v48 = vsel %vm195_vm3, %v207_v9, %v209_v37  ;;  %v212_v49 = vsel %vm195_vm3, %v209_v37, %v211_v38  ;;  %v3491_v50 = vpack.i.bf16 %v165_v46, %v163_v45  ;;  %v72_v53 = vrot.slane %v43_v41, 1 }
  0x17   :  { %3462 = vrot.lane.b32.xlu0 %v3461_v13, %s3968_s21  ;;  %v3496_v52 = vpack.i.bf16 %v212_v49, %v210_v48  ;;  %v119_v56 = vrot.slane %v43_v41, 2  ;;  %v166_v58 = vrot.slane %v43_v41, 3  ;;  %v213_v60 = vrot.slane %v43_v41, 4 }
  0x18   :  { %3467 = vrot.lane.b32.xlu1 %v3466_v15, %s3970_s14  ;;  %v73_v57 = vsel %vm54_vm0, %v70_v20, %v72_v53  ;;  %v415_v61 = vsel %vm101_vm2, %v3677_v55, 0 }
  0x19   :  { %431 = vmatpush1.bf16.msra.mxu0 %v3668_v30  ;;  %v120_v59 = vsel %vm101_vm2, %v117_v26, %v119_v56  ;;  %v167_v62 = vsel %vm148_vm1, %v164_v34, %v166_v58  ;;  %v214_v63 = vsel %vm195_vm3, %v211_v38, %v213_v60 }
  0x1a   :  { %432 = vmatprep.subr.bf16.mxu0 %v3669_v39 }
  0x1b   :  { %3472 = vrot.lane.b32.xlu0 %v3471_v27, %s3969_s26 }
  0x1c   :  { %3477 = vrot.lane.b32.xlu1 %v3476_v31, %s3971_s15 }
  0x1d   :  { %433 = vmatpush1.bf16.msra.mxu0 %v3671_v42 }
  0x1e   :  { %434 = vmatprep.subr.bf16.mxu0 %v3672_v47 }
  0x1f   :  { %3482 = vrot.lane.b32.xlu0 %v3481_v40, %s3968_s21 }
  0x20   :  { %3487 = vrot.lane.b32.xlu1 %v3486_v43, %s3970_s14 }
  0x21   :  { %435 = vmatpush1.bf16.msra.mxu0 %v3674_v51 }
  0x22   :  { %3128 = vmatprep.subr.msk.bf16.mxu0 %vm101_vm2, %v3675_v54 }
  0x23   :  { %3492 = vrot.lane.b32.xlu0 %v3491_v50, %s3969_s26 }
  0x24   :  { %3497 = vrot.lane.b32.xlu1 %v3496_v52, %s3971_s15 }
  0x25   :  { %451 = vmatpush2.bf16.msra.mxu0 %v415_v61 }
  0x27   :  { %90 = vrot.lane.b32.xlu0 %v73_v57, %s3968_s21 }
  0x28   :  { %137 = vrot.lane.b32.xlu1 %v120_v59, %s3970_s14 }
  0x2b   :  { %184 = vrot.lane.b32.xlu0 %v167_v62, %s3969_s26 }
  0x2c   :  { %231 = vrot.lane.b32.xlu1 %v214_v63, %s3971_s15 }
  0x2d   :  { %14 = vsyncpa [#allocation3], 0  ;;  %vm242_vm4 = vcmask 228352   ;;  %vm252_vm5 = vcmask 457728   ;;  %vm262_vm6 = vcmask 687104   ;;  %vm272_vm7 = vcmask 916480  }
  0x2e   :  { %vm398_vm8 = vcmask 97280   ;;  %s3972_s1 = smov 118   ;;  %vm633_vm9 = vcmask 965632   ;;  %s3973_s21 = smov 96   ;;  %vm907_vm10 = vcmask 1041408   ;;  %vm878_vm11 = vcmask 785408  }
  0x2f   :  { %s3974_s26 = smov 80   ;;  %vm966_vm12 = vcmask 654336   ;;  %vm1023_vm13 = vcmask 523264   ;;  %vm2020_vm14 = vcmask 392192   ;;  %vm2450_vm15 = vcmask 883712   ;;  %s3977_s0 = smov 12  }
  0x30   :  { %s3979_s29 = smov 24   ;;  %s3980_s30 = smov 36   ;;  %vm2516_vm1 = vcmask 195584  }
  0x79   :  { %v3423_v3 = vpop.permute.xlu0 %3422 }
  0x7a   :  { %v3433_v4 = vpop.permute.xlu1 %3432  ;;  %v3425_v5 = vunpack.i.h.bf16 %v3423_v3  ;;  %v3424_v6 = vunpack.i.l.bf16 %v3423_v3 }
  0x7b   :  { %v3435_v9 = vunpack.i.h.bf16 %v3433_v4  ;;  %v3434_v11 = vunpack.i.l.bf16 %v3433_v4 }
  0x7c   :  { %v244_v16 = vsel %vm242_vm4, %v4041_v1, %v3425_v5  ;;  %v243_v17 = vsel %vm242_vm4, %v4036_v0, %v3424_v6 }
  0x7d   :  { %v3428_v8 = vpop.permute.xlu0 %3427 }
  0x7e   :  { %v3430_v12 = vunpack.i.h.bf16 %v3428_v8  ;;  %v3429_v13 = vunpack.i.l.bf16 %v3428_v8  ;;  %v3438_v15 = vpop.permute.xlu1 %3437 }
  0x7f   :  { %v3440_v19 = vunpack.i.h.bf16 %v3438_v15  ;;  %v3439_v20 = vunpack.i.l.bf16 %v3438_v15 }
  0x80   :  { %v253_v21 = vsel %vm252_vm5, %v243_v17, %v3429_v13  ;;  %v254_v22 = vsel %vm252_vm5, %v244_v16, %v3430_v12 }
  0x81   :  { %v3443_v23 = vpop.permute.xlu0 %3442  ;;  %v283_v24 = vpack.c.bf16 %v3440_v19, %v3439_v20  ;;  %v263_v25 = vsel %vm262_vm6, %v253_v21, %v3434_v11  ;;  %v264_v26 = vsel %vm262_vm6, %v254_v22, %v3435_v9 }
  0x82   :  { %v3445_v27 = vunpack.i.h.bf16 %v3443_v23  ;;  %v3444_v29 = vunpack.i.l.bf16 %v3443_v23  ;;  %v3448_v30 = vpop.permute.xlu1 %3447  ;;  %v273_v1 = vsel %vm272_vm7, %v263_v25, %v3439_v20  ;;  %v274_v0 = vsel %vm272_vm7, %v264_v26, %v3440_v19 }
  0x83   :  { %v3450_v31 = vunpack.i.h.bf16 %v3448_v30  ;;  %v3449_v32 = vunpack.i.l.bf16 %v3448_v30  ;;  %3129 = vmatprep.mubr.msk.bf16.mxu0 %vm398_vm8, %v283_v24  ;;  %v282_v33 = vpack.c.bf16 %v274_v0, %v273_v1 }
  0x84   :  { %v246_v34 = vsel %vm242_vm4, %v4062_v14, %v3445_v27  ;;  %v245_v35 = vsel %vm242_vm4, %v4046_v2, %v3444_v29 }
  0x85   :  { %v255_v36 = vsel %vm252_vm5, %v245_v35, %v3449_v32  ;;  %v256_v37 = vsel %vm252_vm5, %v246_v34, %v3450_v31  ;;  %v3453_v38 = vpop.permute.xlu0 %3452  ;;  %453 = vmatmul.mubr.bf16.vlgmr.msra.gmra.mxu0 %v282_v33 }
  0x86   :  { %v3455_v39 = vunpack.i.h.bf16 %v3453_v38  ;;  %v3454_v40 = vunpack.i.l.bf16 %v3453_v38  ;;  %v3458_v41 = vpop.permute.xlu1 %3457 }
  0x87   :  { %v3460_v42 = vunpack.i.h.bf16 %v3458_v41  ;;  %v3459_v43 = vunpack.i.l.bf16 %v3458_v41 }
  0x88   :  { %v265_v45 = vsel %vm262_vm6, %v255_v36, %v3454_v40  ;;  %v266_v46 = vsel %vm262_vm6, %v256_v37, %v3455_v39 }
  0x89   :  { %v285_v47 = vpack.c.bf16 %v3460_v42, %v3459_v43  ;;  %v3463_v14 = vpop.permute.xlu0 %3462  ;;  %v275_v48 = vsel %vm272_vm7, %v265_v45, %v3459_v43  ;;  %v276_v2 = vsel %vm272_vm7, %v266_v46, %v3460_v42 }
  0x8a   :  { %v3465_v49 = vunpack.i.h.bf16 %v3463_v14  ;;  %v3464_v50 = vunpack.i.l.bf16 %v3463_v14  ;;  %v3468_v51 = vpop.permute.xlu1 %3467  ;;  %v284_v52 = vpack.c.bf16 %v276_v2, %v275_v48 }
  0x8b   :  { %v3470_v53 = vunpack.i.h.bf16 %v3468_v51  ;;  %v3469_v54 = vunpack.i.l.bf16 %v3468_v51  ;;  %3130 = vmatprep.mubr.msk.bf16.mxu0 %vm398_vm8, %v285_v47 }
  0x8c   :  { %v248_v55 = vsel %vm242_vm4, %v4084_v28, %v3465_v49  ;;  %v247_v56 = vsel %vm242_vm4, %v4069_v18, %v3464_v50 }
  0x8d   :  { %v257_v57 = vsel %vm252_vm5, %v247_v56, %v3469_v54  ;;  %v258_v58 = vsel %vm252_vm5, %v248_v55, %v3470_v53  ;;  %463 = vmatmul.mubr.bf16.gmra.mxu0 %v284_v52  ;;  %v3473_v59 = vpop.permute.xlu0 %3472 }
  0x8e   :  { %v3475_v60 = vunpack.i.h.bf16 %v3473_v59  ;;  %v3474_v61 = vunpack.i.l.bf16 %v3473_v59  ;;  %v3478_v62 = vpop.permute.xlu1 %3477 }
  0x8f   :  { %v3480_v63 = vunpack.i.h.bf16 %v3478_v62  ;;  %v3479_v3 = vunpack.i.l.bf16 %v3478_v62 }
  0x90   :  { %v267_v4 = vsel %vm262_vm6, %v257_v57, %v3474_v61  ;;  %v268_v5 = vsel %vm262_vm6, %v258_v58, %v3475_v60 }
  0x91   :  { %v287_v6 = vpack.c.bf16 %v3480_v63, %v3479_v3  ;;  %v3483_v28 = vpop.permute.xlu0 %3482  ;;  %v277_v8 = vsel %vm272_vm7, %v267_v4, %v3479_v3  ;;  %v278_v18 = vsel %vm272_vm7, %v268_v5, %v3480_v63 }
  0x92   :  { %v3485_v9 = vunpack.i.h.bf16 %v3483_v28  ;;  %v3484_v11 = vunpack.i.l.bf16 %v3483_v28  ;;  %v3488_v12 = vpop.permute.xlu1 %3487  ;;  %v286_v13 = vpack.c.bf16 %v278_v18, %v277_v8 }
  0x93   :  { %v3490_v15 = vunpack.i.h.bf16 %v3488_v12  ;;  %v3489_v16 = vunpack.i.l.bf16 %v3488_v12  ;;  %3131 = vmatprep.mubr.msk.bf16.mxu0 %vm398_vm8, %v287_v6 }
  0x94   :  { %v250_v17 = vsel %vm242_vm4, %v4144_v7, %v3485_v9  ;;  %v249_v19 = vsel %vm242_vm4, %v4110_v44, %v3484_v11 }
  0x95   :  { %v259_v20 = vsel %vm252_vm5, %v249_v19, %v3489_v16  ;;  %v260_v21 = vsel %vm252_vm5, %v250_v17, %v3490_v15  ;;  %473 = vmatmul.mubr.bf16.gmra.mxu0 %v286_v13  ;;  %v3493_v22 = vpop.permute.xlu0 %3492 }
  0x96   :  { %v3495_v23 = vunpack.i.h.bf16 %v3493_v22  ;;  %v3494_v24 = vunpack.i.l.bf16 %v3493_v22  ;;  %v3498_v25 = vpop.permute.xlu1 %3497 }
  0x97   :  { %v3500_v26 = vunpack.i.h.bf16 %v3498_v25  ;;  %v3499_v27 = vunpack.i.l.bf16 %v3498_v25 }
  0x98   :  { %v269_v29 = vsel %vm262_vm6, %v259_v20, %v3494_v24  ;;  %v270_v30 = vsel %vm262_vm6, %v260_v21, %v3495_v23 }
  0x99   :  { %v289_v1 = vpack.c.bf16 %v3500_v26, %v3499_v27  ;;  %v91_v7 = vpop.permute.xlu0 %90  ;;  %v279_v0 = vsel %vm272_vm7, %v269_v29, %v3499_v27  ;;  %v280_v44 = vsel %vm272_vm7, %v270_v30, %v3500_v26 }
  0x9a   :  { %v251_v31 = vsel %vm242_vm4, %v4151_v10, %v91_v7  ;;  %v138_v32 = vpop.permute.xlu1 %137  ;;  %v288_v33 = vpack.c.bf16 %v280_v44, %v279_v0  ;;  %vm3035_vm4 = vcmask 408576  }
  0x9b   :  { %3132 = vmatprep.mubr.msk.bf16.mxu0 %vm398_vm8, %v289_v1  ;;  %v261_v34 = vsel %vm252_vm5, %v251_v31, %v138_v32  ;;  %vm3082_vm5 = vcmask 74752  }
  0x9d   :  { %483 = vmatmul.mubr.bf16.gmra.mxu0 %v288_v33  ;;  %v185_v35 = vpop.permute.xlu0 %184 }
  0x9e   :  { %v271_v36 = vsel %vm262_vm6, %v261_v34, %v185_v35  ;;  %v232_v37 = vpop.permute.xlu1 %231 }
  0x9f   :  { %v281_v38 = vsel %vm272_vm7, %v271_v36, %v232_v37  ;;  %v291_v39 = vpack.c.bf16 %v232_v37, %v232_v37 }
  0xa0   :  { %v290_v40 = vpack.c.bf16 %v281_v38, %v281_v38 }
  0xa1   :  { %3133 = vmatprep.mubr.msk.bf16.mxu0 %vm398_vm8, %v291_v39 }
  0xa5   :  { %493 = vmatmul.mubr.bf16.gmra.mxu0 %v290_v40 }
 0x145   :  { %v454_v41 = vpop.f32.mrf.mxu0 }
 0x146   :  { %v519_v43 = vrot.slane %v454_v41, 1 }
 0x147   :  { %v456_v10 = vpop.f32.mrf.mxu0 }
 0x148   :  { %v522_v47 = vrot.slane %v456_v10, 1 }
 0x149   :  { %v458_v42 = vpop.f32.mrf.mxu0 }
 0x14a   :  { %v520_v45 = vrot.slane %v458_v42, 1 }
 0x14b   :  { %v460_v46 = vpop.f32.mrf.mxu0 }
 0x14c   :  { %v523_v14 = vrot.slane %v460_v46, 1  ;;  %v521_v48 = vsel %vm54_vm0, %v519_v43, %v520_v45 }
 0x14d   :  { %v464_v2 = vpop.f32.mrf.mxu0  ;;  %v4280_v49 = vmax.f32 %v454_v41, %v521_v48  ;;  %v3681_v48 = vld [vmem:[%s5621_s3 + $0x64] ss:$8 sps:$4 sm:$0xff]  }
 0x14e   :  { %v525_v50 = vrot.slane %v464_v2, 1  ;;  %v524_v51 = vsel %vm54_vm0, %v522_v47, %v523_v14  ;;  %v3678_v47 = vld [vmem:[%s5621_s3 + $0x74] ss:$8 sps:$4 sm:$0xff]  }
 0x14f   :  { %601 = vrot.lane.b32.xlu0 %v4280_v49, %s3972_s1  ;;  %v466_v52 = vpop.f32.mrf.mxu0  ;;  %v4285_v53 = vmax.f32 %v456_v10, %v524_v51  ;;  %2033 = vmatprep.subr.bf16.mxu1 %v3678_v47  ;;  %v3686_v51 = vld [vmem:[%s5621_s3 + $0x50] ss:$8 sps:$4 sm:$0xff]  }
 0x150   :  { %v527_v54 = vrot.slane %v466_v52, 1  ;;  %v526_v55 = vsel %vm54_vm0, %v520_v45, %v525_v50 }
 0x151   :  { %603 = vrot.lane.b32.xlu1 %v4285_v53, %s3972_s1  ;;  %v468_v56 = vpop.f32.mrf.mxu0  ;;  %v4290_v57 = vmax.f32 %v458_v42, %v526_v55  ;;  %v3691_v55 = vld [vmem:[%s5621_s3 + $0x174] ss:$8 sps:$4 sm:$0xff]  }
 0x152   :  { %v529_v58 = vrot.slane %v468_v56, 1  ;;  %v528_v59 = vsel %vm54_vm0, %v523_v14, %v527_v54  ;;  %v3680_v14 = vld [vmem:[%s5621_s3 + $0x70] ss:$8 sps:$4 sm:$0xff]   ;;  %2102 = vmatprep.subr.bf16.mxu0 %v3691_v55  ;;  %v3753_v55 = vld [vmem:[%s5621_s3 + $0x94] ss:$8 sps:$4 sm:$0xff]  }
 0x153   :  { %605 = vrot.lane.b32.xlu0 %v4290_v57, %s3972_s1  ;;  %v470_v60 = vpop.f32.mrf.mxu0  ;;  %v4295_v61 = vmax.f32 %v460_v46, %v528_v59  ;;  %2034 = vmatpush1.bf16.msra.mxu1 %v3680_v14  ;;  %v3695_v59 = vld [vmem:[%s5621_s3 + $0x160] ss:$8 sps:$4 sm:$0xff]   ;;  %v3747_v14 = vld [vmem:[%s5621_s3 + $0xa4] ss:$8 sps:$4 sm:$0xff]  }
 0x154   :  { %v531_v62 = vrot.slane %v470_v60, 1  ;;  %v530_v63 = vsel %vm54_vm0, %v525_v50, %v529_v58  ;;  %2035 = vmatprep.subr.bf16.mxu1 %v3681_v48  ;;  %v3684_v50 = vld [vmem:[%s5621_s3 + $0x54] ss:$8 sps:$4 sm:$0xff]   ;;  %v3749_v48 = vld [vmem:[%s5621_s3 + $0x1d0] ss:$8 sps:$4 sm:$0xff]  }
 0x155   :  { %607 = vrot.lane.b32.xlu1 %v4295_v61, %s3972_s1  ;;  %v474_v3 = vpop.f32.mrf.mxu0  ;;  %v4300_v4 = vmax.f32 %v464_v2, %v530_v63  ;;  %v3683_v2 = vld [vmem:[%s5621_s3 + $0x60] ss:$8 sps:$4 sm:$0xff]   ;;  %v3703_v63 = vld [vmem:[%s5621_s3 + $0x154] ss:$8 sps:$4 sm:$0xff]  }
 0x156   :  { %v533_v5 = vrot.slane %v474_v3, 1  ;;  %v532_v6 = vsel %vm54_vm0, %v527_v54, %v531_v62  ;;  %v3689_v54 = vld [vmem:[%s5621_s3 + $0x170] ss:$8 sps:$4 sm:$0xff]  }
 0x157   :  { %609 = vrot.lane.b32.xlu0 %v4300_v4, %s3972_s1  ;;  %v476_v28 = vpop.f32.mrf.mxu0  ;;  %v4305_v8 = vmax.f32 %v466_v52, %v532_v6  ;;  %2036 = vmatpush1.bf16.msra.mxu1 %v3683_v2  ;;  %v3687_v52 = vld [vmem:[%s5621_s3 + $0x44] ss:$8 sps:$4 sm:$0xff]  }
 0x158   :  { %v535_v18 = vrot.slane %v476_v28, 1  ;;  %v534_v9 = vsel %vm54_vm0, %v529_v58, %v533_v5  ;;  %2037 = vmatprep.subr.bf16.mxu1 %v3684_v50  ;;  %2103 = vmatpush1.bf16.msra.mxu0 %v3689_v54  ;;  %v3693_v58 = vld [vmem:[%s5621_s3 + $0x34] ss:$8 sps:$4 sm:$0xff]   ;;  %v3709_v6 = vld [vmem:[%s5621_s3 + $0x144] ss:$8 sps:$4 sm:$0xff]  }
 0x159   :  { %611 = vrot.lane.b32.xlu1 %v4305_v8, %s3972_s1  ;;  %v478_v11 = vpop.f32.mrf.mxu0  ;;  %v4310_v12 = vmax.f32 %v468_v56, %v534_v9  ;;  %v3692_v56 = vld [vmem:[%s5621_s3 + $0x40] ss:$8 sps:$4 sm:$0xff]   ;;  %v3757_v50 = vld [vmem:[%s5621_s3 + $0x1c4] ss:$8 sps:$4 sm:$0xff]  }
 0x15a   :  { %v537_v13 = vrot.slane %v478_v11, 1  ;;  %v536_v15 = vsel %vm54_vm0, %v531_v62, %v535_v18  ;;  %v3698_v62 = vld [vmem:[%s5621_s3 + $0x30] ss:$8 sps:$4 sm:$0xff]   ;;  %v3707_v9 = vld [vmem:[%s5621_s3 + $0x140] ss:$8 sps:$4 sm:$0xff]  }
 0x15b   :  { %613 = vrot.lane.b32.xlu0 %v4310_v12, %s3972_s1  ;;  %v480_v16 = vpop.f32.mrf.mxu0  ;;  %v4315_v17 = vmax.f32 %v470_v60, %v536_v15  ;;  %2038 = vmatpush1.bf16.msra.mxu1 %v3686_v51  ;;  %v3697_v60 = vld [vmem:[%s5621_s3 + $0x164] ss:$8 sps:$4 sm:$0xff]   ;;  %v3752_v51 = vld [vmem:[%s5621_s3 + $0xa0] ss:$8 sps:$4 sm:$0xff]  }
 0x15c   :  { %v539_v19 = vrot.slane %v480_v16, 1  ;;  %v538_v20 = vsel %vm54_vm0, %v533_v5, %v537_v13  ;;  %2039 = vmatprep.subr.bf16.mxu1 %v3687_v52  ;;  %2104 = vmatprep.subr.bf16.mxu0 %v3697_v60  ;;  %v3701_v5 = vld [vmem:[%s5621_s3 + $0x150] ss:$8 sps:$4 sm:$0xff]   ;;  %v3711_v15 = vld [vmem:[%s5621_s3 + $0x4] ss:$8 sps:$4 sm:$0xff]  }
 0x15d   :  { %615 = vrot.lane.b32.xlu1 %v4315_v17, %s3972_s1  ;;  %v484_v21 = vpop.f32.mrf.mxu0  ;;  %v4320_v22 = vmax.f32 %v474_v3, %v538_v20  ;;  %v3699_v3 = vld [vmem:[%s5621_s3 + $0x24] ss:$8 sps:$4 sm:$0xff]   ;;  %2105 = vmatpush1.bf16.msra.mxu0 %v3695_v59  ;;  %v3716_v20 = vld [vmem:[%s5621_s3] ss:$8 sps:$4 sm:$0xff]  }
 0x15e   :  { %v541_v23 = vrot.slane %v484_v21, 1  ;;  %v540_v24 = vsel %vm54_vm0, %v535_v18, %v539_v19  ;;  %2106 = vmatprep.subr.bf16.mxu0 %v3703_v63  ;;  %v3705_v18 = vld [vmem:[%s5621_s3 + $0x14] ss:$8 sps:$4 sm:$0xff]   ;;  %v3755_v59 = vld [vmem:[%s5621_s3 + $0x1c0] ss:$8 sps:$4 sm:$0xff]  }
 0x15f   :  { %v486_v25 = vpop.f32.mrf.mxu0  ;;  %617 = vrot.lane.b32.xlu0 %v4320_v22, %s3972_s1  ;;  %v4325_v26 = vmax.f32 %v476_v28, %v540_v24  ;;  %2040 = vmatpush1.bf16.msra.mxu1 %v3692_v56  ;;  %v3704_v28 = vld [vmem:[%s5621_s3 + $0x20] ss:$8 sps:$4 sm:$0xff]   ;;  %v3727_v24 = vld [vmem:[%s5621_s3 + $0x114] ss:$8 sps:$4 sm:$0xff]   ;;  %v3758_v63 = vld [vmem:[%s5621_s3 + $0x90] ss:$8 sps:$4 sm:$0xff]  }
 0x160   :  { %v543_v27 = vrot.slane %v486_v25, 1  ;;  %v542_v29 = vsel %vm54_vm0, %v537_v13, %v541_v23  ;;  %2041 = vmatprep.subr.bf16.mxu1 %v3693_v58  ;;  %v3710_v13 = vld [vmem:[%s5621_s3 + $0x10] ss:$8 sps:$4 sm:$0xff]   ;;  %v674_v56 = vld [vmem:[%s5620_s2] sm:$0x3] }
 0x161   :  { %619 = vrot.lane.b32.xlu1 %v4325_v26, %s3972_s1  ;;  %v488_v30 = vpop.f32.mrf.mxu0  ;;  %v4330_v1 = vmax.f32 %v478_v11, %v542_v29  ;;  %2107 = vmatpush1.bf16.msra.mxu0 %v3701_v5  ;;  %v3715_v11 = vld [vmem:[%s5621_s3 + $0x134] ss:$8 sps:$4 sm:$0xff]   ;;  %v3725_v29 = vld [vmem:[%s5621_s3 + $0x110] ss:$8 sps:$4 sm:$0xff]  }
 0x162   :  { %v545_v7 = vrot.slane %v488_v30, 1  ;;  %v544_v0 = vsel %vm54_vm0, %v539_v19, %v543_v27  ;;  %2108 = vmatprep.subr.bf16.mxu0 %v3709_v6  ;;  %v3721_v19 = vld [vmem:[%s5621_s3 + $0x124] ss:$8 sps:$4 sm:$0xff]  }
 0x163   :  { %v490_v44 = vpop.f32.mrf.mxu0  ;;  %621 = vrot.lane.b32.xlu0 %v4330_v1, %s3972_s1  ;;  %v4335_v31 = vmax.f32 %v480_v16, %v544_v0  ;;  %2042 = vmatpush1.bf16.msra.mxu1 %v3698_v62  ;;  %v3713_v16 = vld [vmem:[%s5621_s3 + $0x130] ss:$8 sps:$4 sm:$0xff]   ;;  %v3729_v0 = vld [vmem:[%s5621_s3 + $0xd4] ss:$8 sps:$4 sm:$0xff]  }
 0x164   :  { %v547_v32 = vrot.slane %v490_v44, 1  ;;  %v546_v33 = vsel %vm54_vm0, %v541_v23, %v545_v7  ;;  %2043 = vmatprep.subr.bf16.mxu1 %v3699_v3  ;;  %v3719_v23 = vld [vmem:[%s5621_s3 + $0x120] ss:$8 sps:$4 sm:$0xff]  }
 0x165   :  { %623 = vrot.lane.b32.xlu1 %v4335_v31, %s3972_s1  ;;  %v494_v34 = vpop.f32.mrf.mxu0  ;;  %v4340_v35 = vmax.f32 %v484_v21, %v546_v33  ;;  %2109 = vmatpush1.bf16.msra.mxu0 %v3707_v9  ;;  %v3717_v21 = vld [vmem:[%s5621_s3 + $0xf4] ss:$8 sps:$4 sm:$0xff]   ;;  %v3734_v33 = vld [vmem:[%s5621_s3 + $0xd0] ss:$8 sps:$4 sm:$0xff]  }
 0x166   :  { %v549_v36 = vrot.slane %v494_v34, 1  ;;  %v548_v37 = vsel %vm54_vm0, %v543_v27, %v547_v32  ;;  %2110 = vmatprep.subr.bf16.mxu0 %v3715_v11  ;;  %v3723_v27 = vld [vmem:[%s5621_s3 + $0xe4] ss:$8 sps:$4 sm:$0xff]  }
 0x167   :  { %v496_v38 = vpop.f32.mrf.mxu0  ;;  %625 = vrot.lane.b32.xlu0 %v4340_v35, %s3972_s1  ;;  %v4345_v39 = vmax.f32 %v486_v25, %v548_v37  ;;  %2044 = vmatpush1.bf16.msra.mxu1 %v3704_v28  ;;  %v3722_v25 = vld [vmem:[%s5621_s3 + $0xf0] ss:$8 sps:$4 sm:$0xff]   ;;  %v3735_v34 = vld [vmem:[%s5621_s3 + $0xc4] ss:$8 sps:$4 sm:$0xff]  }
 0x168   :  { %v551_v40 = vrot.slane %v496_v38, 1  ;;  %v550_v41 = vsel %vm54_vm0, %v545_v7, %v549_v36  ;;  %2045 = vmatprep.subr.bf16.mxu1 %v3705_v18  ;;  %v3728_v7 = vld [vmem:[%s5621_s3 + $0xe0] ss:$8 sps:$4 sm:$0xff]   ;;  %v3737_v36 = vld [vmem:[%s5621_s3 + $0x1f0] ss:$8 sps:$4 sm:$0xff]  }
 0x169   :  { %627 = vrot.lane.b32.xlu1 %v4345_v39, %s3972_s1  ;;  %v4350_v10 = vmax.f32 %v488_v30, %v550_v41  ;;  %v498_v42 = vpop.f32.mrf.mxu0  ;;  %2111 = vmatpush1.bf16.msra.mxu0 %v3713_v16  ;;  %v3733_v30 = vld [vmem:[%s5621_s3 + $0x104] ss:$8 sps:$4 sm:$0xff]   ;;  %v3740_v38 = vld [vmem:[%s5621_s3 + $0xc0] ss:$8 sps:$4 sm:$0xff]   ;;  %v3741_v41 = vld [vmem:[%s5621_s3 + $0xb4] ss:$8 sps:$4 sm:$0xff]  }
 0x16a   :  { %v552_v43 = vsel %vm54_vm0, %v547_v32, %v551_v40  ;;  %2112 = vmatprep.subr.bf16.mxu0 %v3721_v19  ;;  %v3739_v32 = vld [vmem:[%s5621_s3 + $0x1f4] ss:$8 sps:$4 sm:$0xff]   ;;  %v3745_v37 = vld [vmem:[%s5621_s3 + $0x1e4] ss:$8 sps:$4 sm:$0xff]   ;;  %v676_v40 = vlaneseq  ;;  %v3743_v42 = vld [vmem:[%s5621_s3 + $0x1e0] ss:$8 sps:$4 sm:$0xff]  }
 0x16b   :  { %629 = vrot.lane.b32.xlu0 %v4350_v10, %s3972_s1  ;;  %v4355_v45 = vmax.f32 %v490_v44, %v552_v43  ;;  %v499_v46 = vpop.f32.mrf.mxu0  ;;  %2046 = vmatpush1.bf16.msra.mxu1 %v3710_v13  ;;  %v3731_v44 = vld [vmem:[%s5621_s3 + $0x100] ss:$8 sps:$4 sm:$0xff]   ;;  %v3751_v43 = vld [vmem:[%s5621_s3 + $0x1d4] ss:$8 sps:$4 sm:$0xff]   ;;  %vm2577_vm0 = vcmask 1040384  }
 0x16c   :  { %2047 = vmatprep.subr.bf16.mxu1 %v3711_v15  ;;  %v3746_v46 = vld [vmem:[%s5621_s3 + $0xb0] ss:$8 sps:$4 sm:$0xff]   ;;  %v4500_v47 = vshrl.u32 %v676_v40, 7 }
 0x16d   :  { %631 = vrot.lane.b32.xlu1 %v4355_v45, %s3972_s1  ;;  %2113 = vmatpush1.bf16.msra.mxu0 %v3719_v23  ;;  %v3763_v23 = vld [vmem:[%s5621_s3 + $0x1b4] ss:$8 sps:$4 sm:$0xff]  }
 0x16e   :  { %2114 = vmatprep.subr.bf16.mxu0 %v3727_v24  ;;  %v678_v52 = vsub.s32 0, %v4500_v47  ;;  %v682_v62 = vsub.s32 1, %v4500_v47  ;;  %v3925_v47 = vld [vmem:[%s5623_s5 + $0x98] sm:$0xff]  }
 0x16f   :  { %2048 = vmatpush1.bf16.msra.mxu1 %v3716_v20 }
 0x170   :  { %2049 = vmatprep.subr.bf16.mxu1 %v3717_v21  ;;  %v4531_v3 = vrot.slane %v674_v56, %v678_v52  ;;  %v4539_v13 = vrot.slane %v674_v56, %v682_v62 }
 0x171   :  { %2115 = vmatpush1.bf16.msra.mxu0 %v3725_v29  ;;  %v3764_v29 = vld [vmem:[%s5621_s3 + $0x80] ss:$8 sps:$4 sm:$0xff]  }
 0x172   :  { %2116 = vmatprep.subr.bf16.mxu0 %v3733_v30 }
 0x173   :  { %2050 = vmatpush2.bf16.msra.mxu1 %v3722_v25 }
 0x174   :  { %2051 = vmatprep.subr.bf16.mxu1 %v3723_v27 }
 0x175   :  { %2117 = vmatpush1.bf16.msra.mxu0 %v3731_v44 }
 0x176   :  { %2118 = vmatprep.subr.bf16.mxu0 %v3739_v32 }
 0x177   :  { %2052 = vmatpush2.bf16.msra.mxu1 %v3728_v7 }
 0x178   :  { %2053 = vmatprep.subr.bf16.mxu1 %v3729_v0 }
 0x179   :  { %2119 = vmatpush2.bf16.msra.mxu0 %v3737_v36 }
 0x17a   :  { %2120 = vmatprep.subr.bf16.mxu0 %v3745_v37 }
 0x17b   :  { %2054 = vmatpush2.bf16.msra.mxu1 %v3734_v33 }
 0x17c   :  { %2055 = vmatprep.subr.bf16.mxu1 %v3735_v34 }
 0x17d   :  { %2121 = vmatpush2.bf16.msra.mxu0 %v3743_v42  ;;  %v3767_v42 = vld [vmem:[%s5621_s3 + $0x1a4] ss:$8 sps:$4 sm:$0xff]  }
 0x17e   :  { %2122 = vmatprep.subr.bf16.mxu0 %v3751_v43 }
 0x17f   :  { %2056 = vmatpush2.bf16.msra.mxu1 %v3740_v38 }
 0x180   :  { %2057 = vmatprep.subr.bf16.mxu1 %v3741_v41  ;;  %v3765_v41 = vld [vmem:[%s5621_s3 + $0x1a0] ss:$8 sps:$4 sm:$0xff]  }
 0x181   :  { %2123 = vmatpush2.bf16.msra.mxu0 %v3749_v48 }
 0x182   :  { %2124 = vmatprep.subr.bf16.mxu0 %v3757_v50 }
 0x183   :  { %2058 = vmatpush2.bf16.msra.mxu1 %v3746_v46 }
 0x184   :  { %2059 = vmatprep.subr.bf16.mxu1 %v3747_v14 }
 0x185   :  { %2125 = vmatpush2.bf16.msra.mxu0 %v3755_v59 }
 0x186   :  { %2126 = vmatprep.subr.bf16.mxu0 %v3763_v23 }
 0x187   :  { %2060 = vmatpush2.bf16.msra.mxu1 %v3752_v51 }
 0x188   :  { %2061 = vmatprep.subr.bf16.mxu1 %v3753_v55 }
 0x18b   :  { %2062 = vmatpush2.bf16.msra.mxu1 %v3758_v63  ;;  %v3771_v63 = vld [vmem:[%s5621_s3 + $0x190] ss:$8 sps:$4 sm:$0xff]  }
 0x1c1   :  { %v602_v2 = vpop.permute.xlu0 %601 }
 0x1c3   :  { %v604_v54 = vpop.permute.xlu1 %603 }
 0x1c4   :  { %v634_v58 = vsel %vm633_vm9, %v602_v2, %v604_v54  ;;  %v659_v15 = vmax.f32 %v4285_v53, %v604_v54  ;;  %v3761_v53 = vld [vmem:[%s5621_s3 + $0x1b0] ss:$8 sps:$4 sm:$0xff]   ;;  %v3770_v2 = vld [vmem:[%s5621_s3 + $0x274] ss:$8 sps:$4 sm:$0xff]  }
 0x1c5   :  { %v606_v60 = vpop.permute.xlu0 %605  ;;  %v658_v5 = vmax.f32 %v4280_v49, %v634_v58  ;;  %2127 = vmatpush2.bf16.msra.mxu0 %v3761_v53  ;;  %v3773_v54 = vld [vmem:[%s5621_s3 + $0x194] ss:$8 sps:$4 sm:$0xff]  }
 0x1c6   :  { %2128 = vmatprep.subr.bf16.mxu0 %v3767_v42 }
 0x1c7   :  { %v608_v6 = vpop.permute.xlu1 %607  ;;  %v686_v16 = vadd.f32 %v4531_v3, %v658_v5 }
 0x1c8   :  { %v635_v28 = vsel %vm633_vm9, %v606_v60, %v608_v6  ;;  %v661_v18 = vmax.f32 %v4295_v61, %v608_v6  ;;  %v3759_v61 = vld [vmem:[%s5621_s3 + $0x84] ss:$8 sps:$4 sm:$0xff]  }
 0x1c9   :  { %v660_v9 = vmax.f32 %v4290_v57, %v635_v28  ;;  %v610_v11 = vpop.permute.xlu0 %609  ;;  %2063 = vmatprep.subr.bf16.mxu1 %v3759_v61  ;;  %v4564_v7 = vmax.f32 %v686_v16, 0.0  ;;  %2129 = vmatpush2.bf16.msra.mxu0 %v3765_v41 }
 0x1ca   :  { %v689_v20 = vadd.f32 %v4539_v13, %v661_v18  ;;  %2064 = vmatpush2.bf16.msra.mxu1 %v3764_v29  ;;  %2130 = vmatprep.subr.bf16.mxu0 %v3773_v54 }
 0x1cb   :  { %v688_v49 = vadd.f32 %v4531_v3, %v660_v9  ;;  %v612_v19 = vpop.permute.xlu1 %611  ;;  %v734_v14 = vrot.slane %v4564_v7, 2  ;;  %2171 = vmatprep.subr.bf16.mxu1 %v3770_v2 }
 0x1cc   :  { %v636_v57 = vsel %vm633_vm9, %v610_v11, %v612_v19  ;;  %v663_v21 = vmax.f32 %v4305_v8, %v612_v19  ;;  %v687_v8 = vadd.f32 %v4539_v13, %v659_v15  ;;  %v4567_v32 = vmax.f32 %v689_v20, 0.0  ;;  %v3779_v15 = vld [vmem:[%s5621_s3 + $0x184] ss:$8 sps:$4 sm:$0xff]  }
 0x1cd   :  { %v4556_v24 = vmax.f32 %v688_v49, 0.0  ;;  %v662_v25 = vmax.f32 %v4300_v4, %v636_v57  ;;  %v614_v27 = vpop.permute.xlu0 %613  ;;  %2131 = vmatpush2.bf16.msra.mxu0 %v3771_v63 }
 0x1ce   :  { %v691_v30 = vadd.f32 %v4539_v13, %v663_v21  ;;  %v4576_v40 = vmax.f32 %v687_v8, 0.0  ;;  %v738_v51 = vrot.slane %v4567_v32, 2  ;;  %2132 = vmatprep.subr.bf16.mxu0 %v3779_v15 }
 0x1cf   :  { %v690_v0 = vadd.f32 %v4531_v3, %v662_v25  ;;  %v616_v44 = vpop.permute.xlu1 %615  ;;  %v735_v38 = vrot.slane %v4556_v24, 2 }
 0x1d0   :  { %v4569_v4 = vmax.f32 %v691_v30, 0.0  ;;  %v637_v33 = vsel %vm633_vm9, %v614_v27, %v616_v44  ;;  %v737_v18 = vrot.slane %v4576_v40, 2  ;;  %v665_v9 = vmax.f32 %v4315_v17, %v616_v44  ;;  %v3777_v17 = vld [vmem:[%s5621_s3 + $0x180] ss:$8 sps:$4 sm:$0xff]  }
 0x1d1   :  { %v4572_v34 = vmax.f32 %v690_v0, 0.0  ;;  %v664_v36 = vmax.f32 %v4310_v12, %v637_v33  ;;  %v618_v37 = vpop.permute.xlu0 %617  ;;  %v736_v59 = vsel %vm101_vm2, %v734_v14, %v735_v38  ;;  %v821_v30 = vrot.slane %v4556_v24, 4  ;;  %2133 = vmatpush2.bf16.msra.mxu0 %v3777_v17 }
 0x1d2   :  { %v742_v48 = vrot.slane %v4569_v4, 2  ;;  %v739_v61 = vsel %vm101_vm2, %v737_v18, %v738_v51  ;;  %v693_v27 = vadd.f32 %v4539_v13, %v665_v9  ;;  %v909_v17 = vrot.slane %v4556_v24, 6 }
 0x1d3   :  { %v692_v43 = vadd.f32 %v4531_v3, %v664_v36  ;;  %v620_v46 = vpop.permute.xlu1 %619  ;;  %v740_v12 = vrot.slane %v4572_v34, 2  ;;  %v914_v15 = vrot.slane %v4572_v34, 6 }
 0x1d4   :  { %v638_v50 = vsel %vm633_vm9, %v618_v37, %v620_v46  ;;  %v667_v29 = vmax.f32 %v4325_v26, %v620_v46  ;;  %v3788_v26 = vld [vmem:[%s5621_s3 + $0x374] ss:$8 sps:$4 sm:$0xff]   ;;  %v4646_v46 = vmax.f32 %v693_v27, 0.0 }
 0x1d5   :  { %v4596_v55 = vmax.f32 %v692_v43, 0.0  ;;  %v666_v56 = vmax.f32 %v4320_v22, %v638_v50  ;;  %v622_v58 = vpop.permute.xlu0 %621  ;;  %v741_v60 = vsel %vm101_vm2, %v735_v38, %v740_v12  ;;  %v743_v22 = vsel %vm101_vm2, %v738_v51, %v742_v48  ;;  %2240 = vmatprep.subr.bf16.mxu0 %v3788_v26 }
 0x1d6   :  { %v3501_v5 = vpack.i.bf16 %v741_v60, %v736_v59  ;;  %v3506_v57 = vpack.i.bf16 %v743_v22, %v739_v61  ;;  %v820_v43 = vrot.slane %v4564_v7, 4  ;;  %v695_v14 = vadd.f32 %v4539_v13, %v667_v29 }
 0x1d7   :  { %v694_v6 = vadd.f32 %v4531_v3, %v666_v56  ;;  %v624_v28 = vpop.permute.xlu1 %623  ;;  %v744_v20 = vrot.slane %v4596_v55, 2  ;;  %v908_v29 = vrot.slane %v4564_v7, 6  ;;  %v832_v26 = vrot.slane %v4646_v46, 4 }
 0x1d8   :  { %v639_v11 = vsel %vm633_vm9, %v622_v58, %v624_v28  ;;  %3502 = vrot.lane.b32.xlu0 %v3501_v5, %s3971_s15  ;;  %v669_v21 = vmax.f32 %v4335_v31, %v624_v28  ;;  %v822_v51 = vsel %vm195_vm3, %v820_v43, %v821_v30  ;;  %v828_v58 = vrot.slane %v4569_v4, 4 }
 0x1d9   :  { %v4615_v16 = vmax.f32 %v694_v6, 0.0  ;;  %v668_v49 = vmax.f32 %v4330_v1, %v639_v11  ;;  %v626_v19 = vpop.permute.xlu0 %625  ;;  %v826_v1 = vrot.slane %v4572_v34, 4  ;;  %v745_v33 = vsel %vm101_vm2, %v740_v12, %v744_v20 }
 0x1da   :  { %v697_v38 = vadd.f32 %v4539_v13, %v669_v21  ;;  %v4662_v6 = vmax.f32 %v695_v14, 0.0  ;;  %v746_v28 = vrot.slane %v4646_v46, 2  ;;  %v823_v11 = vrot.slane %v4576_v40, 4 }
 0x1db   :  { %v696_v53 = vadd.f32 %v4531_v3, %v668_v49  ;;  %v628_v23 = vpop.permute.xlu1 %627  ;;  %v748_v25 = vrot.slane %v4615_v16, 2 }
 0x1dc   :  { %v640_v8 = vsel %vm633_vm9, %v626_v19, %v628_v23  ;;  %3507 = vrot.lane.b32.xlu0 %v3506_v57, %s3971_s15  ;;  %v4657_v59 = vmax.f32 %v697_v38, 0.0  ;;  %v671_v18 = vmax.f32 %v4345_v39, %v628_v23  ;;  %v747_v21 = vsel %vm101_vm2, %v742_v48, %v746_v28 }
 0x1dd   :  { %v4632_v0 = vmax.f32 %v696_v53, 0.0  ;;  %v670_v31 = vmax.f32 %v4340_v35, %v640_v8  ;;  %v630_v44 = vpop.permute.xlu0 %629  ;;  %v749_v36 = vsel %vm101_vm2, %v744_v20, %v748_v25  ;;  %v827_v35 = vsel %vm195_vm3, %v821_v30, %v826_v1 }
 0x1de   :  { %v3511_v37 = vpack.i.bf16 %v749_v36, %v745_v33  ;;  %v3516_v56 = vpack.i.bf16 %v827_v35, %v822_v51  ;;  %v754_v20 = vrot.slane %v4657_v59, 2  ;;  %v699_v57 = vadd.f32 %v4539_v13, %v671_v18 }
 0x1df   :  { %v698_v41 = vadd.f32 %v4531_v3, %v670_v31  ;;  %v632_v42 = vpop.permute.xlu1 %631  ;;  %v752_v54 = vrot.slane %v4632_v0, 2  ;;  %v750_v23 = vrot.slane %v4662_v6, 2  ;;  %v915_v8 = vsel %vm907_vm10, %v909_v17, %v914_v15 }
 0x1e0   :  { %v641_v12 = vsel %vm633_vm9, %v630_v44, %v632_v42  ;;  %3512 = vrot.lane.b32.xlu1 %v3511_v37, %s3971_s15  ;;  %v673_v60 = vmax.f32 %v4355_v45, %v632_v42  ;;  %v834_v44 = vrot.slane %v4615_v16, 4  ;;  %v910_v48 = vsel %vm907_vm10, %v908_v29, %v909_v17 }
 0x1e1   :  { %v4651_v2 = vmax.f32 %v698_v41, 0.0  ;;  %v672_v50 = vmax.f32 %v4350_v10, %v641_v12  ;;  %v824_v10 = vrot.slane %v4567_v32, 4  ;;  %v753_v9 = vsel %vm101_vm2, %v748_v25, %v752_v54 }
 0x1e2   :  { %v701_v49 = vadd.f32 %v4539_v13, %v673_v60  ;;  %v755_v31 = vsel %vm101_vm2, %v750_v23, %v754_v20  ;;  %v836_v13 = vrot.slane %v4662_v6, 4  ;;  %v4697_v33 = vmax.f32 %v699_v57, 0.0 }
 0x1e3   :  { %v700_v63 = vadd.f32 %v4531_v3, %v672_v50  ;;  %v756_v5 = vrot.slane %v4651_v2, 2  ;;  %v829_v19 = vsel %vm195_vm3, %v824_v10, %v828_v58  ;;  %v825_v39 = vsel %vm195_vm3, %v823_v11, %v824_v10 }
 0x1e4   :  { %3517 = vrot.lane.b32.xlu1 %v3516_v56, %s3973_s21  ;;  %v3531_v25 = vpack.i.bf16 %v829_v19, %v825_v39  ;;  %v4689_v30 = vmax.f32 %v701_v49, 0.0  ;;  %v751_v36 = vsel %vm101_vm2, %v746_v28, %v750_v23  ;;  %v830_v37 = vrot.slane %v4596_v55, 4 }
 0x1e5   :  { %v4668_v22 = vmax.f32 %v700_v63, 0.0  ;;  %v757_v45 = vsel %vm101_vm2, %v752_v54, %v756_v5  ;;  %v3541_v38 = vpack.i.bf16 %v755_v31, %v751_v36  ;;  %v3536_v41 = vpack.i.bf16 %v915_v8, %v910_v48 }
 0x1e6   :  { %v3521_v3 = vpack.i.bf16 %v757_v45, %v753_v9  ;;  %v922_v42 = vrot.slane %v4615_v16, 6  ;;  %v837_v43 = vsel %vm195_vm3, %v832_v26, %v836_v13  ;;  %v835_v35 = vsel %vm195_vm3, %v830_v37, %v834_v44 }
 0x1e7   :  { %v760_v61 = vrot.slane %v4668_v22, 2  ;;  %v762_v14 = vrot.slane %v4689_v30, 2  ;;  %v918_v12 = vrot.slane %v4596_v55, 6  ;;  %v833_v50 = vsel %vm195_vm3, %v828_v58, %v832_v26 }
 0x1e8   :  { %3522 = vrot.lane.b32.xlu0 %v3521_v3, %s3971_s15  ;;  %v831_v51 = vsel %vm195_vm3, %v826_v1, %v830_v37  ;;  %v758_v54 = vrot.slane %v4697_v33, 2  ;;  %v3551_v56 = vpack.i.bf16 %v837_v43, %v833_v50  ;;  %v844_v28 = vrot.slane %v4697_v33, 4 }
 0x1e9   :  { %v761_v53 = vsel %vm101_vm2, %v756_v5, %v760_v61  ;;  %v3546_v60 = vpack.i.bf16 %v835_v35, %v831_v51  ;;  %v923_v63 = vsel %vm907_vm10, %v918_v12, %v922_v42  ;;  %v1080_v5 = vpack.c.bf16 %v4556_v24, %v4564_v7 }
 0x1ea   :  { %v3526_v27 = vpack.i.bf16 %v747_v21, %v761_v53  ;;  %v763_v10 = vsel %vm101_vm2, %v758_v54, %v762_v14  ;;  %v842_v18 = vrot.slane %v4651_v2, 4  ;;  %v1090_v58 = vpack.c.bf16 %v4596_v55, %v4572_v34 }
 0x1eb   :  { %v1100_v1 = vpack.c.bf16 %v4632_v0, %v4615_v16  ;;  %v759_v9 = vsel %vm101_vm2, %v754_v20, %v758_v54  ;;  %v919_v45 = vsel %vm907_vm10, %v914_v15, %v918_v12  ;;  %v840_v3 = vrot.slane %v4657_v59, 4 }
 0x1ec   :  { %3532 = vrot.lane.b32.xlu0 %v3531_v25, %s3973_s21  ;;  %3527 = vrot.lane.b32.xlu1 %v3526_v27, %s3971_s15  ;;  %v838_v11 = vrot.slane %v4632_v0, 4  ;;  %v3561_v49 = vpack.i.bf16 %v763_v10, %v759_v9  ;;  %v3556_v19 = vpack.i.bf16 %v923_v63, %v919_v45  ;;  %v846_v61 = vrot.slane %v4668_v22, 4 }
 0x1ed   :  { %v845_v39 = vsel %vm195_vm3, %v840_v3, %v844_v28  ;;  %v848_v57 = vrot.slane %v4689_v30, 4  ;;  %v930_v21 = vrot.slane %v4651_v2, 6  ;;  %v841_v15 = vsel %vm195_vm3, %v836_v13, %v840_v3 }
 0x1ee   :  { %v843_v17 = vsel %vm195_vm3, %v838_v11, %v842_v18  ;;  %v839_v20 = vsel %vm195_vm3, %v834_v44, %v838_v11  ;;  %v926_v53 = vrot.slane %v4632_v0, 6  ;;  %v3571_v23 = vpack.i.bf16 %v845_v39, %v841_v15 }
 0x1ef   :  { %v3566_v25 = vpack.i.bf16 %v843_v17, %v839_v20  ;;  %v847_v27 = vsel %vm195_vm3, %v842_v18, %v846_v61  ;;  %v849_v29 = vsel %vm195_vm3, %v844_v28, %v848_v57  ;;  %v920_v31 = vrot.slane %v4646_v46, 6  ;;  %v3768_v20 = vld [vmem:[%s5621_s3 + $0x270] ss:$8 sps:$4 sm:$0xff]  }
 0x1f0   :  { %3542 = vrot.lane.b32.xlu0 %v3541_v38, %s3971_s15  ;;  %3537 = vrot.lane.b32.xlu1 %v3536_v41, %s3974_s26  ;;  %v931_v8 = vsel %vm907_vm10, %v926_v53, %v930_v21  ;;  %v934_v48 = vrot.slane %v4668_v22, 6  ;;  %v927_v13 = vsel %vm907_vm10, %v922_v42, %v926_v53  ;;  %v912_v44 = vrot.slane %v4567_v32, 6 }
 0x1f1   :  { %v916_v36 = vrot.slane %v4569_v4, 6  ;;  %v3581_v26 = vpack.i.bf16 %v849_v29, %v847_v27  ;;  %v3576_v37 = vpack.i.bf16 %v931_v8, %v927_v13  ;;  %v911_v41 = vrot.slane %v4576_v40, 6 }
 0x1f2   :  { %v935_v43 = vsel %vm907_vm10, %v930_v21, %v934_v48  ;;  %v928_v50 = vrot.slane %v4657_v59, 6  ;;  %v924_v51 = vrot.slane %v4662_v6, 6  ;;  %v3601_v54 = vpack.i.bf16 %v4569_v4, %v4567_v32 }
 0x1f3   :  { %v921_v38 = vsel %vm907_vm10, %v916_v36, %v920_v31  ;;  %v917_v35 = vsel %vm907_vm10, %v912_v44, %v916_v36  ;;  %v913_v42 = vsel %vm907_vm10, %v911_v41, %v912_v44  ;;  %v3611_v10 = vpack.i.bf16 %v4615_v16, %v4596_v55  ;;  %v3783_v41 = vld [vmem:[%s5621_s3 + $0x240] ss:$8 sps:$4 sm:$0xff]   ;;  %v3798_v16 = vld [vmem:[%s5621_s3 + $0x350] ss:$8 sps:$4 sm:$0xff]  }
 0x1f4   :  { %3552 = vrot.lane.b32.xlu0 %v3551_v56, %s3973_s21  ;;  %3547 = vrot.lane.b32.xlu1 %v3546_v60, %s3973_s21  ;;  %v3591_v14 = vpack.i.bf16 %v921_v38, %v917_v35  ;;  %v3586_v12 = vpack.i.bf16 %v913_v42, %v935_v43  ;;  %v3596_v56 = vpack.i.bf16 %v4572_v34, %v4556_v24  ;;  %v932_v18 = vrot.slane %v4697_v33, 6  ;;  %v3786_v34 = vld [vmem:[%s5621_s3 + $0x370] ss:$8 sps:$4 sm:$0xff]   ;;  %v3791_v35 = vld [vmem:[%s5621_s3 + $0x234] ss:$8 sps:$4 sm:$0xff]  }
 0x1f5   :  { %v929_v60 = vsel %vm907_vm10, %v924_v51, %v928_v50  ;;  %v925_v63 = vsel %vm907_vm10, %v920_v31, %v924_v51  ;;  %v3616_v9 = vpack.i.bf16 %v4662_v6, %v4646_v46  ;;  %v3626_v3 = vpack.i.bf16 %v4697_v33, %v4657_v59  ;;  %v3780_v31 = vld [vmem:[%s5621_s3 + $0x250] ss:$8 sps:$4 sm:$0xff]   ;;  %v3794_v42 = vld [vmem:[%s5621_s3 + $0x364] ss:$8 sps:$4 sm:$0xff]  }
 0x1f6   :  { %v3606_v28 = vpack.i.bf16 %v929_v60, %v925_v63  ;;  %v933_v45 = vsel %vm907_vm10, %v928_v50, %v932_v18  ;;  %v3621_v11 = vpack.i.bf16 %v4651_v2, %v4632_v0  ;;  %v3800_v63 = vld [vmem:[%s5621_s3 + $0x354] ss:$8 sps:$4 sm:$0xff]   ;;  %vm3981_vm3 = vmmov 0  }
 0x1f8   :  { %3562 = vrot.lane.b32.xlu0 %v3561_v49, %s3971_s15  ;;  %3557 = vrot.lane.b32.xlu1 %v3556_v19, %s3974_s26  ;;  %s3975_s15 = smov 64   ;;  %v936_v49 = vrot.slane %v4689_v30, 6 }
 0x1fa   :  { %v937_v19 = vsel %vm907_vm10, %v932_v18, %v936_v49 }
 0x1fc   :  { %3572 = vrot.lane.b32.xlu0 %v3571_v23, %s3973_s21  ;;  %3567 = vrot.lane.b32.xlu1 %v3566_v25, %s3973_s21  ;;  %v3782_v25 = vld [vmem:[%s5621_s3 + $0x254] ss:$8 sps:$4 sm:$0xff]  }
 0x200   :  { %3582 = vrot.lane.b32.xlu0 %v3581_v26, %s3973_s21  ;;  %3577 = vrot.lane.b32.xlu1 %v3576_v37, %s3974_s26 }
 0x204   :  { %3592 = vrot.lane.b32.xlu0 %v3591_v14, %s3974_s26  ;;  %3587 = vrot.lane.b32.xlu1 %v3586_v12, %s3974_s26 }
 0x208   :  { %3602 = vrot.lane.b32.xlu0 %v3601_v54, %s3975_s15  ;;  %3597 = vrot.lane.b32.xlu1 %v3596_v56, %s3975_s15  ;;  %v3789_v56 = vld [vmem:[%s5621_s3 + $0x230] ss:$8 sps:$4 sm:$0xff]  }
 0x20c   :  { %3612 = vrot.lane.b32.xlu0 %v3611_v10, %s3975_s15  ;;  %3607 = vrot.lane.b32.xlu1 %v3606_v28, %s3974_s26 }
 0x210   :  { %960 = vrot.lane.b32.xlu0 %v933_v45, %s3974_s26  ;;  %3617 = vrot.lane.b32.xlu1 %v3616_v9, %s3975_s15  ;;  %v3795_v45 = vld [vmem:[%s5621_s3 + $0x220] ss:$8 sps:$4 sm:$0xff]  }
 0x214   :  { %3627 = vrot.lane.b32.xlu0 %v3626_v3, %s3975_s15  ;;  %3622 = vrot.lane.b32.xlu1 %v3621_v11, %s3975_s15  ;;  %v3806_v3 = vld [vmem:[%s5621_s3 + $0x344] ss:$8 sps:$4 sm:$0xff]  }
 0x218   :  { %1019 = vrot.lane.b32.xlu0 %v4668_v22, %s3975_s15  ;;  %964 = vrot.lane.b32.xlu1 %v937_v19, %s3974_s26  ;;  %v3776_v22 = vld [vmem:[%s5621_s3 + $0x264] ss:$8 sps:$4 sm:$0xff]  }
 0x21c   :  { %1021 = vrot.lane.b32.xlu1 %v4689_v30, %s3975_s15 }
 0x24a   :  { %v3503_v61 = vpop.permute.xlu0 %3502 }
 0x24b   :  { %v3505_v39 = vunpack.i.h.bf16 %v3503_v61  ;;  %v3504_v17 = vunpack.i.l.bf16 %v3503_v61 }
 0x24d   :  { %v1052_v57 = vsel %vm272_vm7, %v4576_v40, %v3504_v17  ;;  %v1053_v21 = vsel %vm272_vm7, %v4567_v32, %v3505_v39  ;;  %v3774_v32 = vld [vmem:[%s5621_s3 + $0x260] ss:$8 sps:$4 sm:$0xff]  }
 0x24e   :  { %v1081_v15 = vpack.c.bf16 %v1053_v21, %v1052_v57  ;;  %v3508_v30 = vpop.permute.xlu0 %3507  ;;  %v3801_v57 = vld [vmem:[%s5621_s3 + $0x210] ss:$8 sps:$4 sm:$0xff]   ;;  %v3804_v21 = vld [vmem:[%s5621_s3 + $0x340] ss:$8 sps:$4 sm:$0xff]  }
 0x24f   :  { %v3510_v27 = vunpack.i.h.bf16 %v3508_v30  ;;  %v3509_v29 = vunpack.i.l.bf16 %v3508_v30 }
 0x250   :  { %2065 = vmatprep.mubr.bf16.mxu1 %v1081_v15 }
 0x251   :  { %2066 = vmatmul.mubr.bf16.vlgmr.msra.gmra.mxu1 %v1080_v5  ;;  %v793_v44 = vsel %vm272_vm7, %v3505_v39, %v3510_v27 }
 0x252   :  { %2172 = vmatpush1.bf16.msra.mxu1 %v3768_v20  ;;  %v4797_v40 = vpop.permute.xlu1 %3512 }
 0x253   :  { %v3515_v53 = vunpack.i.h.bf16 %v4797_v40  ;;  %v3514_v23 = vunpack.i.l.bf16 %v4797_v40  ;;  %2173 = vmatprep.subr.bf16.mxu1 %v3776_v22 }
 0x255   :  { %v1054_v24 = vsel %vm272_vm7, %v4569_v4, %v3514_v23  ;;  %v1055_v7 = vsel %vm272_vm7, %v4646_v46, %v3515_v53  ;;  %v3785_v4 = vld [vmem:[%s5621_s3 + $0x244] ss:$8 sps:$4 sm:$0xff]   ;;  %v792_v46 = vsel %vm272_vm7, %v3504_v17, %v3509_v29 }
 0x256   :  { %2174 = vmatpush1.bf16.msra.mxu1 %v3774_v32  ;;  %v4815_v5 = vpop.permute.xlu1 %3517  ;;  %v1091_v8 = vpack.c.bf16 %v1055_v7, %v1054_v24  ;;  %v1082_v55 = vpack.c.bf16 %v793_v44, %v792_v46  ;;  %v1110_v32 = vpack.c.bf16 %v4651_v2, %v4651_v2  ;;  %v3810_v46 = vld [vmem:[%s5621_s3 + $0x330] ss:$8 sps:$4 sm:$0xff]  }
 0x257   :  { %v3520_v48 = vunpack.i.h.bf16 %v4815_v5  ;;  %v3519_v13 = vunpack.i.l.bf16 %v4815_v5  ;;  %2175 = vmatprep.subr.bf16.mxu1 %v3782_v25  ;;  %v3809_v25 = vld [vmem:[%s5621_s3 + $0x204] ss:$8 sps:$4 sm:$0xff]   ;;  %v3864_v5 = vld [vmem:[%s5621_s3 + $0x470] ss:$8 sps:$4 sm:$0xff]  }
 0x258   :  { %2075 = vmatprep.mubr.bf16.mxu1 %v1091_v8 }
 0x259   :  { %2076 = vmatmul.mubr.bf16.gmra.mxu1 %v1090_v58  ;;  %v1059_v36 = vsel %vm878_vm11, %v3509_v29, %v3519_v13  ;;  %v1060_v26 = vsel %vm878_vm11, %v3510_v27, %v3520_v48  ;;  %v3812_v27 = vld [vmem:[%s5621_s3 + $0x334] ss:$8 sps:$4 sm:$0xff]  }
 0x25a   :  { %2176 = vmatpush1.bf16.msra.mxu1 %v3780_v31  ;;  %v4836_v37 = vpop.permute.xlu0 %3522  ;;  %v1083_v38 = vpack.c.bf16 %v1060_v26, %v1059_v36  ;;  %v3815_v26 = vld [vmem:[%s5621_s3 + $0x2f4] ss:$8 sps:$4 sm:$0xff]  }
 0x25b   :  { %v3525_v58 = vunpack.i.h.bf16 %v4836_v37  ;;  %v3524_v43 = vunpack.i.l.bf16 %v4836_v37  ;;  %2177 = vmatprep.subr.bf16.mxu1 %v3785_v4 }
 0x25c   :  { %2134 = vmatprep.mubr.bf16.mxu0 %v1083_v38  ;;  %v3818_v38 = vld [vmem:[%s5621_s3 + $0x324] ss:$8 sps:$4 sm:$0xff]  }
 0x25d   :  { %2135 = vmatmul.mubr.bf16.vlgmr.msra.gmra.mxu0 %v1082_v55  ;;  %v1056_v14 = vsel %vm272_vm7, %v4662_v6, %v3524_v43  ;;  %v1057_v12 = vsel %vm272_vm7, %v4657_v59, %v3525_v58  ;;  %v3792_v6 = vld [vmem:[%s5621_s3 + $0x360] ss:$8 sps:$4 sm:$0xff]   ;;  %v3797_v59 = vld [vmem:[%s5621_s3 + $0x224] ss:$8 sps:$4 sm:$0xff]   ;;  %v3813_v55 = vld [vmem:[%s5621_s3 + $0x2f0] ss:$8 sps:$4 sm:$0xff]  }
 0x25e   :  { %2178 = vmatpush1.bf16.msra.mxu1 %v3783_v41  ;;  %2241 = vmatpush1.bf16.msra.mxu0 %v3786_v34  ;;  %v4860_v50 = vpop.permute.xlu0 %3532  ;;  %v4862_v51 = vpop.permute.xlu1 %3527  ;;  %v1101_v54 = vpack.c.bf16 %v1057_v12, %v1056_v14  ;;  %v3821_v12 = vld [vmem:[%s5621_s3 + $0x2e4] ss:$8 sps:$4 sm:$0xff]  }
 0x25f   :  { %v3529_v60 = vunpack.i.l.bf16 %v4862_v51  ;;  %2179 = vmatprep.subr.bf16.mxu1 %v3791_v35  ;;  %2242 = vmatprep.subr.bf16.mxu0 %v3794_v42  ;;  %v3535_v11 = vunpack.i.h.bf16 %v4860_v50  ;;  %v3534_v49 = vunpack.i.l.bf16 %v4860_v50  ;;  %v3530_v61 = vunpack.i.h.bf16 %v4862_v51  ;;  %v3816_v35 = vld [vmem:[%s5621_s3 + $0x320] ss:$8 sps:$4 sm:$0xff]  }
 0x260   :  { %2083 = vmatprep.mubr.bf16.mxu1 %v1101_v54  ;;  %v3824_v54 = vld [vmem:[%s5621_s3 + $0x314] ss:$8 sps:$4 sm:$0xff]  }
 0x261   :  { %2084 = vmatmul.mubr.bf16.gmra.mxu1 %v1100_v1  ;;  %v1058_v10 = vsel %vm272_vm7, %v4697_v33, %v3529_v60  ;;  %v3803_v33 = vld [vmem:[%s5621_s3 + $0x214] ss:$8 sps:$4 sm:$0xff]   ;;  %v794_v44 = vsel %vm272_vm7, %v3514_v23, %v3530_v61 }
 0x262   :  { %2180 = vmatpush1.bf16.msra.mxu1 %v3789_v56  ;;  %2243 = vmatpush1.bf16.msra.mxu0 %v3792_v6  ;;  %v4884_v28 = vpop.permute.xlu0 %3542  ;;  %v4886_v18 = vpop.permute.xlu1 %3537  ;;  %v1111_v9 = vpack.c.bf16 %v1058_v10, %v1058_v10 }
 0x263   :  { %v3540_v0 = vunpack.i.h.bf16 %v4886_v18  ;;  %v3539_v1 = vunpack.i.l.bf16 %v4886_v18  ;;  %2181 = vmatprep.subr.bf16.mxu1 %v3797_v59  ;;  %2244 = vmatprep.subr.bf16.mxu0 %v3800_v63  ;;  %v3544_v19 = vunpack.i.l.bf16 %v4884_v28  ;;  %v3545_v34 = vunpack.i.h.bf16 %v4884_v28 }
 0x264   :  { %2093 = vmatprep.mubr.bf16.mxu1 %v1111_v9  ;;  %v3819_v9 = vld [vmem:[%s5621_s3 + $0x2e0] ss:$8 sps:$4 sm:$0xff]  }
 0x265   :  { %v1066_v15 = vsel %vm966_vm12, %v3534_v49, %v3539_v1  ;;  %v1067_v20 = vsel %vm966_vm12, %v3535_v11, %v3540_v0  ;;  %v795_v29 = vsel %vm272_vm7, %v3515_v53, %v3544_v19  ;;  %v3807_v53 = vld [vmem:[%s5621_s3 + $0x200] ss:$8 sps:$4 sm:$0xff]  }
 0x266   :  { %2182 = vmatpush1.bf16.msra.mxu1 %v3795_v45  ;;  %2245 = vmatpush1.bf16.msra.mxu0 %v3798_v16  ;;  %v4906_v39 = vpop.permute.xlu0 %3552  ;;  %v4908_v17 = vpop.permute.xlu1 %3547  ;;  %v1085_v24 = vpack.c.bf16 %v1067_v20, %v1066_v15  ;;  %v1092_v36 = vpack.c.bf16 %v795_v29, %v794_v44  ;;  %v796_v45 = vsel %vm272_vm7, %v3524_v43, %v3545_v34  ;;  %v3828_v15 = vld [vmem:[%s5621_s3 + $0x300] ss:$8 sps:$4 sm:$0xff]   ;;  %v3833_v20 = vld [vmem:[%s5621_s3 + $0x2c4] ss:$8 sps:$4 sm:$0xff]  }
 0x267   :  { %v3550_v22 = vunpack.i.h.bf16 %v4908_v17  ;;  %v3549_v30 = vunpack.i.l.bf16 %v4908_v17  ;;  %2183 = vmatprep.subr.bf16.mxu1 %v3803_v33  ;;  %2246 = vmatprep.subr.bf16.mxu0 %v3806_v3 }
 0x269   :  { %2094 = vmatmul.mubr.bf16.gmra.mxu1 %v1110_v32  ;;  %v1061_v7 = vsel %vm878_vm11, %v3530_v61, %v3549_v30  ;;  %v1062_v2 = vsel %vm878_vm11, %v3544_v19, %v3550_v22  ;;  %v3827_v19 = vld [vmem:[%s5621_s3 + $0x2d4] ss:$8 sps:$4 sm:$0xff]   ;;  %v3830_v61 = vld [vmem:[%s5621_s3 + $0x304] ss:$8 sps:$4 sm:$0xff]  }
 0x26a   :  { %2184 = vmatpush1.bf16.msra.mxu1 %v3801_v57  ;;  %2247 = vmatpush1.bf16.msra.mxu0 %v3804_v21  ;;  %v3563_v8 = vpop.permute.xlu0 %3562  ;;  %v4945_v31 = vpop.permute.xlu1 %3557  ;;  %v1093_v4 = vpack.c.bf16 %v1062_v2, %v1061_v7  ;;  %v3825_v21 = vld [vmem:[%s5621_s3 + $0x2d0] ss:$8 sps:$4 sm:$0xff]   ;;  %v3836_v32 = vld [vmem:[%s5621_s3 + $0x3f4] ss:$8 sps:$4 sm:$0xff]  }
 0x26b   :  { %2203 = vmatprep.mubr.bf16.mxu1 %v1085_v24  ;;  %2185 = vmatprep.subr.bf16.mxu1 %v3809_v25  ;;  %v3564_v41 = vunpack.i.l.bf16 %v3563_v8  ;;  %v3565_v16 = vunpack.i.h.bf16 %v3563_v8  ;;  %v3831_v24 = vld [vmem:[%s5621_s3 + $0x2c0] ss:$8 sps:$4 sm:$0xff]   ;;  %v3834_v7 = vld [vmem:[%s5621_s3 + $0x3f0] ss:$8 sps:$4 sm:$0xff]  }
 0x26c   :  { %2144 = vmatprep.mubr.bf16.mxu0 %v1093_v4  ;;  %2248 = vmatprep.subr.bf16.mxu0 %v3812_v27  ;;  %v3839_v4 = vld [vmem:[%s5621_s3 + $0x2b4] ss:$8 sps:$4 sm:$0xff]  }
 0x26d   :  { %2145 = vmatmul.mubr.bf16.gmra.mxu0 %v1092_v36  ;;  %v797_v56 = vsel %vm272_vm7, %v3525_v58, %v3564_v41  ;;  %v3822_v58 = vld [vmem:[%s5621_s3 + $0x310] ss:$8 sps:$4 sm:$0xff]   ;;  %v798_v25 = vsel %vm272_vm7, %v3529_v60, %v3565_v16 }
 0x26e   :  { %2186 = vmatpush1.bf16.msra.mxu1 %v3807_v53  ;;  %2249 = vmatpush1.bf16.msra.mxu0 %v3810_v46  ;;  %v4963_v40 = vpop.permute.xlu0 %3572  ;;  %v4965_v23 = vpop.permute.xlu1 %3567  ;;  %v1102_v3 = vpack.c.bf16 %v797_v56, %v796_v45  ;;  %v1112_v8 = vpack.c.bf16 %v798_v25, %v798_v25  ;;  %v3842_v53 = vld [vmem:[%s5621_s3 + $0x3e4] ss:$8 sps:$4 sm:$0xff]   ;;  %v3837_v36 = vld [vmem:[%s5621_s3 + $0x2b0] ss:$8 sps:$4 sm:$0xff]   ;;  %v3559_v45 = vunpack.i.l.bf16 %v4945_v31  ;;  %v3869_v25 = vld [vmem:[%s5621_s3 + $0x394] ss:$8 sps:$4 sm:$0xff]  }
 0x26f   :  { %v3570_v42 = vunpack.i.h.bf16 %v4965_v23  ;;  %v3569_v14 = vunpack.i.l.bf16 %v4965_v23  ;;  %2187 = vmatprep.subr.bf16.mxu1 %v3815_v26  ;;  %2250 = vmatprep.subr.bf16.mxu0 %v3818_v38  ;;  %v3840_v38 = vld [vmem:[%s5621_s3 + $0x3e0] ss:$8 sps:$4 sm:$0xff]   ;;  %v3854_v56 = vld [vmem:[%s5621_s3 + $0x3c4] ss:$8 sps:$4 sm:$0xff]  }
 0x270   :  { %v3887_v23 = vld [vmem:[%s5621_s3 + $0x424] ss:$8 sps:$4 sm:$0xff]  }
 0x271   :  { %v1063_v6 = vsel %vm878_vm11, %v3545_v34, %v3569_v14  ;;  %v1064_v59 = vsel %vm878_vm11, %v3564_v41, %v3570_v42  ;;  %v3845_v41 = vld [vmem:[%s5621_s3 + $0x2a4] ss:$8 sps:$4 sm:$0xff]  }
 0x272   :  { %2188 = vmatpush2.bf16.msra.mxu1 %v3813_v55  ;;  %2251 = vmatpush1.bf16.msra.mxu0 %v3816_v35  ;;  %v4990_v63 = vpop.permute.xlu0 %3582  ;;  %v4992_v10 = vpop.permute.xlu1 %3577  ;;  %v1103_v28 = vpack.c.bf16 %v1064_v59, %v1063_v6  ;;  %v3848_v55 = vld [vmem:[%s5621_s3 + $0x3d4] ss:$8 sps:$4 sm:$0xff]   ;;  %v3843_v35 = vld [vmem:[%s5621_s3 + $0x2a0] ss:$8 sps:$4 sm:$0xff]   ;;  %v3849_v6 = vld [vmem:[%s5621_s3 + $0x290] ss:$8 sps:$4 sm:$0xff]  }
 0x273   :  { %v3584_v33 = vunpack.i.l.bf16 %v4990_v63  ;;  %2189 = vmatprep.subr.bf16.mxu1 %v3821_v12  ;;  %2252 = vmatprep.subr.bf16.mxu0 %v3824_v54  ;;  %v3846_v12 = vld [vmem:[%s5621_s3 + $0x3d0] ss:$8 sps:$4 sm:$0xff]   ;;  %v3851_v54 = vld [vmem:[%s5621_s3 + $0x294] ss:$8 sps:$4 sm:$0xff]   ;;  %v3852_v59 = vld [vmem:[%s5621_s3 + $0x3c0] ss:$8 sps:$4 sm:$0xff]  }
 0x274   :  { %2152 = vmatprep.mubr.bf16.mxu0 %v1103_v28  ;;  %v3857_v28 = vld [vmem:[%s5621_s3 + $0x284] ss:$8 sps:$4 sm:$0xff]  }
 0x275   :  { %2153 = vmatmul.mubr.bf16.gmra.mxu0 %v1102_v3  ;;  %v1065_v37 = vsel %vm878_vm11, %v3565_v16, %v3584_v33  ;;  %v3855_v16 = vld [vmem:[%s5621_s3 + $0x280] ss:$8 sps:$4 sm:$0xff]   ;;  %v3555_v3 = vunpack.i.h.bf16 %v4906_v39 }
 0x276   :  { %2190 = vmatpush2.bf16.msra.mxu1 %v3819_v9  ;;  %2253 = vmatpush1.bf16.msra.mxu0 %v3822_v58  ;;  %v5013_v43 = vpop.permute.xlu1 %3587  ;;  %v1113_v57 = vpack.c.bf16 %v1065_v37, %v1065_v37  ;;  %v5030_v27 = vpop.permute.xlu0 %3592  ;;  %v3860_v9 = vld [vmem:[%s5621_s3 + $0x3b4] ss:$8 sps:$4 sm:$0xff]   ;;  %v3560_v58 = vunpack.i.h.bf16 %v4945_v31  ;;  %v3888_v31 = vld [vmem:[%s5621_s3 + $0x410] ss:$8 sps:$4 sm:$0xff]  }
 0x277   :  { %2191 = vmatprep.subr.bf16.mxu1 %v3827_v19  ;;  %2254 = vmatprep.subr.bf16.mxu0 %v3830_v61  ;;  %v3590_v2 = vunpack.i.h.bf16 %v5013_v43  ;;  %v3594_v46 = vunpack.i.l.bf16 %v5030_v27  ;;  %v3554_v19 = vunpack.i.l.bf16 %v4906_v39  ;;  %v3858_v61 = vld [vmem:[%s5621_s3 + $0x3b0] ss:$8 sps:$4 sm:$0xff]   ;;  %v3866_v37 = vld [vmem:[%s5621_s3 + $0x474] ss:$8 sps:$4 sm:$0xff]   ;;  %v880_v39 = vsel %vm878_vm11, %v3520_v48, %v3535_v11  ;;  %v3861_v11 = vld [vmem:[%s5621_s3 + $0x3a0] ss:$8 sps:$4 sm:$0xff]  }
 0x278   :  { %2162 = vmatprep.mubr.bf16.mxu0 %v1113_v57  ;;  %v879_v57 = vsel %vm878_vm11, %v3519_v13, %v3534_v49  ;;  %v1069_v13 = vsel %vm966_vm12, %v3555_v3, %v3560_v58  ;;  %v3872_v49 = vld [vmem:[%s5621_s3 + $0x464] ss:$8 sps:$4 sm:$0xff]  }
 0x279   :  { %v1084_v48 = vpack.c.bf16 %v880_v39, %v879_v57 }
 0x27a   :  { %2192 = vmatpush2.bf16.msra.mxu1 %v3825_v21  ;;  %2255 = vmatpush1.bf16.msra.mxu0 %v3828_v15  ;;  %v5032_v29 = vpop.permute.xlu1 %3597  ;;  %v3863_v21 = vld [vmem:[%s5621_s3 + $0x3a4] ss:$8 sps:$4 sm:$0xff]   ;;  %v5122_v15 = vpop.permute.xlu0 %3602 }
 0x27b   :  { %v3600_v51 = vunpack.i.h.bf16 %v5032_v29  ;;  %v3599_v60 = vunpack.i.l.bf16 %v5032_v29  ;;  %2193 = vmatprep.subr.bf16.mxu1 %v3833_v20  ;;  %2256 = vmatprep.subr.bf16.mxu0 %v3836_v32  ;;  %v1068_v20 = vsel %vm966_vm12, %v3554_v19, %v3559_v45 }
 0x27c   :  { %v1095_v32 = vpack.c.bf16 %v1069_v13, %v1068_v20 }
 0x27d   :  { %2163 = vmatmul.mubr.bf16.gmra.mxu0 %v1112_v8  ;;  %v1073_v44 = vsel %vm1023_vm13, %v3590_v2, %v3599_v60  ;;  %v1074_v26 = vsel %vm1023_vm13, %v3594_v46, %v3600_v51  ;;  %v3870_v8 = vld [vmem:[%s5621_s3 + $0x460] ss:$8 sps:$4 sm:$0xff]  }
 0x27e   :  { %2194 = vmatpush2.bf16.msra.mxu1 %v3831_v24  ;;  %2257 = vmatpush2.bf16.msra.mxu0 %v3834_v7  ;;  %v1087_v34 = vpack.c.bf16 %v1074_v26, %v1073_v44  ;;  %v5133_v50 = vpop.permute.xlu1 %3607  ;;  %v3580_v24 = vunpack.i.h.bf16 %v4992_v10  ;;  %v3579_v7 = vunpack.i.l.bf16 %v4992_v10  ;;  %v5151_v44 = vpop.permute.xlu0 %3612  ;;  %v3878_v26 = vld [vmem:[%s5621_s3 + $0x454] ss:$8 sps:$4 sm:$0xff]  }
 0x27f   :  { %2195 = vmatprep.subr.bf16.mxu1 %v3839_v4  ;;  %2258 = vmatprep.subr.bf16.mxu0 %v3842_v53  ;;  %v3575_v4 = vunpack.i.h.bf16 %v4963_v40  ;;  %v3574_v53 = vunpack.i.l.bf16 %v4963_v40  ;;  %v882_v40 = vsel %vm878_vm11, %v3550_v22, %v3555_v3  ;;  %v3614_v17 = vunpack.i.l.bf16 %v5151_v44  ;;  %v3899_v10 = vld [vmem:[%s5621_s3 + $0x494] ss:$8 sps:$4 sm:$0xff]  }
 0x280   :  { %2272 = vmatprep.mubr.bf16.mxu0 %v1087_v34  ;;  %v3609_v22 = vunpack.i.l.bf16 %v5133_v50  ;;  %v967_v3 = vsel %vm966_vm12, %v3539_v1, %v3590_v2  ;;  %v3884_v1 = vld [vmem:[%s5621_s3 + $0x434] ss:$8 sps:$4 sm:$0xff]  }
 0x281   :  { %v884_v57 = vsel %vm878_vm11, %v3570_v42, %v3575_v4  ;;  %v3610_v42 = vunpack.i.h.bf16 %v5133_v50 }
 0x282   :  { %2196 = vmatpush2.bf16.msra.mxu1 %v3837_v36  ;;  %2259 = vmatpush2.bf16.msra.mxu0 %v3840_v38  ;;  %v3867_v36 = vld [vmem:[%s5621_s3 + $0x390] ss:$8 sps:$4 sm:$0xff]   ;;  %v881_v38 = vsel %vm878_vm11, %v3549_v30, %v3554_v19  ;;  %v5168_v34 = vpop.permute.xlu1 %3617  ;;  %v3615_v30 = vunpack.i.h.bf16 %v5151_v44  ;;  %v3879_v19 = vld [vmem:[%s5621_s3 + $0x440] ss:$8 sps:$4 sm:$0xff]   ;;  %v961_v18 = vpop.permute.xlu0 %960 }
 0x283   :  { %2197 = vmatprep.subr.bf16.mxu1 %v3845_v41  ;;  %2260 = vmatprep.subr.bf16.mxu0 %v3848_v55  ;;  %v3875_v41 = vld [vmem:[%s5621_s3 + $0x384] ss:$8 sps:$4 sm:$0xff]   ;;  %v1070_v55 = vsel %vm966_vm12, %v3574_v53, %v3579_v7 }
 0x286   :  { %2198 = vmatpush2.bf16.msra.mxu1 %v3843_v35  ;;  %2261 = vmatpush2.bf16.msra.mxu0 %v3846_v12  ;;  %v1071_v35 = vsel %vm966_vm12, %v3575_v4, %v3580_v24  ;;  %v3876_v12 = vld [vmem:[%s5621_s3 + $0x450] ss:$8 sps:$4 sm:$0xff]   ;;  %v3605_v4 = vunpack.i.h.bf16 %v5122_v15 }
 0x287   :  { %2199 = vmatprep.subr.bf16.mxu1 %v3851_v54  ;;  %2262 = vmatprep.subr.bf16.mxu0 %v3854_v56  ;;  %v1094_v54 = vpack.c.bf16 %v882_v40, %v881_v38  ;;  %v3873_v56 = vld [vmem:[%s5621_s3 + $0x380] ss:$8 sps:$4 sm:$0xff]  }
 0x28a   :  { %2200 = vmatpush2.bf16.msra.mxu1 %v3849_v6  ;;  %2263 = vmatpush2.bf16.msra.mxu0 %v3852_v59  ;;  %v3881_v6 = vld [vmem:[%s5621_s3 + $0x444] ss:$8 sps:$4 sm:$0xff]   ;;  %v3595_v59 = vunpack.i.h.bf16 %v5030_v27 }
 0x28b   :  { %2201 = vmatprep.subr.bf16.mxu1 %v3857_v28  ;;  %2264 = vmatprep.subr.bf16.mxu0 %v3860_v9  ;;  %v1105_v28 = vpack.c.bf16 %v1071_v35, %v1070_v55  ;;  %v968_v9 = vsel %vm966_vm12, %v3540_v0, %v3594_v46  ;;  %v1076_v0 = vsel %vm1023_vm13, %v3609_v22, %v3615_v30  ;;  %v3585_v46 = vunpack.i.h.bf16 %v4990_v63  ;;  %v3891_v35 = vld [vmem:[%s5621_s3 + $0x400] ss:$8 sps:$4 sm:$0xff]  }
 0x28c   :  { %v1075_v27 = vsel %vm1023_vm13, %v3595_v59, %v3614_v17  ;;  %v1086_v2 = vpack.c.bf16 %v968_v9, %v967_v3  ;;  %v3900_v9 = vld [vmem:[%s5621_s3 + $0x480] ss:$8 sps:$4 sm:$0xff]   ;;  %v3620_v3 = vunpack.i.h.bf16 %v5168_v34 }
 0x28d   :  { %v1097_v39 = vpack.c.bf16 %v1076_v0, %v1075_v27 }
 0x28e   :  { %2202 = vmatpush2.bf16.msra.mxu1 %v3855_v16  ;;  %2265 = vmatpush2.bf16.msra.mxu0 %v3858_v61  ;;  %v3589_v16 = vunpack.i.l.bf16 %v5013_v43  ;;  %v5210_v61 = vpop.permute.xlu1 %3622  ;;  %v1025_v43 = vsel %vm1023_vm13, %v3600_v51, %v3605_v4  ;;  %v1027_v51 = vsel %vm1023_vm13, %v3615_v30, %v3620_v3 }
 0x28f   :  { %2309 = vmatprep.subr.bf16.mxu1 %v3866_v37  ;;  %2266 = vmatprep.subr.bf16.mxu0 %v3863_v21  ;;  %v883_v37 = vsel %vm878_vm11, %v3569_v14, %v3574_v53  ;;  %v3625_v20 = vunpack.i.h.bf16 %v5210_v61  ;;  %v3624_v13 = vunpack.i.l.bf16 %v5210_v61  ;;  %v3604_v53 = vunpack.i.l.bf16 %v5122_v15  ;;  %v3893_v15 = vld [vmem:[%s5621_s3 + $0x404] ss:$8 sps:$4 sm:$0xff]  }
 0x290   :  { %v1072_v21 = vsel %vm966_vm12, %v3585_v46, %v3589_v16  ;;  %v1104_v14 = vpack.c.bf16 %v884_v57, %v883_v37 }
 0x291   :  { %2204 = vmatmul.mubr.bf16.vlgmr.msra.gmra.mxu1 %v1084_v48  ;;  %v1115_v48 = vpack.c.bf16 %v1072_v21, %v1072_v21  ;;  %v1078_v50 = vsel %vm1023_vm13, %v961_v18, %v3625_v20  ;;  %v1089_v63 = vpack.c.bf16 %v3605_v4, %v3604_v53 }
 0x292   :  { %2213 = vmatprep.mubr.bf16.mxu1 %v1095_v32  ;;  %2310 = vmatpush1.bf16.msra.mxu1 %v3864_v5  ;;  %v3882_v5 = vld [vmem:[%s5621_s3 + $0x430] ss:$8 sps:$4 sm:$0xff]   ;;  %v3885_v32 = vld [vmem:[%s5621_s3 + $0x420] ss:$8 sps:$4 sm:$0xff]   ;;  %v965_v40 = vpop.permute.xlu1 %964 }
 0x293   :  { %2267 = vmatpush2.bf16.msra.mxu0 %v3861_v11  ;;  %2311 = vmatprep.subr.bf16.mxu1 %v3872_v49  ;;  %v5233_v11 = vpop.permute.xlu0 %3627  ;;  %v970_v49 = vsel %vm966_vm12, %v3560_v58, %v3609_v22  ;;  %v3890_v58 = vld [vmem:[%s5621_s3 + $0x414] ss:$8 sps:$4 sm:$0xff]   ;;  %v971_v22 = vsel %vm966_vm12, %v3579_v7, %v3610_v42  ;;  %v973_v7 = vsel %vm966_vm12, %v3589_v16, %v965_v40 }
 0x294   :  { %2268 = vmatprep.subr.bf16.mxu0 %v3869_v25  ;;  %v1077_v25 = vsel %vm1023_vm13, %v3610_v42, %v3624_v13  ;;  %v1024_v16 = vsel %vm1023_vm13, %v3599_v60, %v3604_v53 }
 0x295   :  { %v1107_v38 = vpack.c.bf16 %v1078_v50, %v1077_v25  ;;  %v1088_v27 = vpack.c.bf16 %v1025_v43, %v1024_v16 }
 0x296   :  { %2312 = vmatpush1.bf16.msra.mxu1 %v3870_v8  ;;  %v969_v8 = vsel %vm966_vm12, %v3559_v45, %v3595_v59  ;;  %v3902_v59 = vld [vmem:[%s5621_s3 + $0x484] ss:$8 sps:$4 sm:$0xff]   ;;  %v1022_v37 = vpop.permute.xlu1 %1021 }
 0x297   :  { %2269 = vmatpush2.bf16.msra.mxu0 %v3867_v36  ;;  %2313 = vmatprep.subr.bf16.mxu1 %v3878_v26  ;;  %v1096_v36 = vpack.c.bf16 %v970_v49, %v969_v8  ;;  %v885_v26 = vsel %vm878_vm11, %v3584_v33, %v3585_v46  ;;  %v1020_v45 = vpop.permute.xlu0 %1019  ;;  %v972_v33 = vsel %vm966_vm12, %v3580_v24, %v961_v18  ;;  %v3630_v46 = vunpack.i.h.bf16 %v5233_v11 }
 0x298   :  { %2270 = vmatprep.subr.bf16.mxu0 %v3875_v41  ;;  %v1114_v41 = vpack.c.bf16 %v885_v26, %v885_v26  ;;  %v1079_v55 = vsel %vm1023_vm13, %v965_v40, %v1020_v45  ;;  %v1106_v24 = vpack.c.bf16 %v972_v33, %v971_v22  ;;  %v3629_v18 = vunpack.i.l.bf16 %v5233_v11 }
 0x299   :  { %2214 = vmatmul.mubr.bf16.gmra.mxu1 %v1094_v54  ;;  %v1117_v54 = vpack.c.bf16 %v1079_v55, %v1079_v55  ;;  %v1030_v44 = vsel %vm1023_vm13, %v1020_v45, %v1022_v37 }
 0x29a   :  { %2221 = vmatprep.mubr.bf16.mxu1 %v1105_v28  ;;  %2314 = vmatpush1.bf16.msra.mxu1 %v3876_v12  ;;  %v3896_v12 = vld [vmem:[%s5621_s3 + $0x4a4] ss:$8 sps:$4 sm:$0xff]   ;;  %v1116_v28 = vpack.c.bf16 %v973_v7, %v973_v7  ;;  %v1118_v30 = vpack.c.bf16 %v1030_v44, %v1030_v44 }
 0x29b   :  { %2271 = vmatpush2.bf16.msra.mxu0 %v3873_v56  ;;  %2315 = vmatprep.subr.bf16.mxu1 %v3881_v6  ;;  %v3894_v56 = vld [vmem:[%s5621_s3 + $0x4a0] ss:$8 sps:$4 sm:$0xff]   ;;  %v3897_v6 = vld [vmem:[%s5621_s3 + $0x490] ss:$8 sps:$4 sm:$0xff]   ;;  %s3976_s3 = smov 108  }
 0x29e   :  { %2273 = vmatmul.mubr.bf16.vlgmr.msra.gmra.mxu0 %v1086_v2  ;;  %2316 = vmatpush1.bf16.msra.mxu1 %v3879_v19  ;;  %v3619_v19 = vunpack.i.l.bf16 %v5168_v34  ;;  %v1109_v34 = vpack.c.bf16 %v3630_v46, %v3629_v18  ;;  %v1029_v2 = vsel %vm1023_vm13, %v3625_v20, %v3630_v46 }
 0x29f   :  { %2282 = vmatprep.mubr.bf16.mxu0 %v1097_v39  ;;  %2317 = vmatprep.subr.bf16.mxu1 %v3884_v1  ;;  %v1028_v1 = vsel %vm1023_vm13, %v3624_v13, %v3629_v18 }
 0x2a0   :  { %v1099_v0 = vpack.c.bf16 %v3620_v3, %v3619_v19  ;;  %v1026_v29 = vsel %vm1023_vm13, %v3614_v17, %v3619_v19  ;;  %v1108_v57 = vpack.c.bf16 %v1029_v2, %v1028_v1  ;;  %v1119_v17 = vpack.c.bf16 %v1022_v37, %v1022_v37 }
 0x2a1   :  { %2222 = vmatmul.mubr.bf16.gmra.mxu1 %v1104_v14  ;;  %v1098_v60 = vpack.c.bf16 %v1027_v51, %v1026_v29 }
 0x2a2   :  { %2231 = vmatprep.mubr.bf16.mxu1 %v1115_v48  ;;  %2318 = vmatpush1.bf16.msra.mxu1 %v3882_v5 }
 0x2a3   :  { %2319 = vmatprep.subr.bf16.mxu1 %v3887_v23 }
 0x2a6   :  { %2283 = vmatmul.mubr.bf16.gmra.mxu0 %v1096_v36  ;;  %2320 = vmatpush1.bf16.msra.mxu1 %v3885_v32 }
 0x2a7   :  { %2290 = vmatprep.mubr.bf16.mxu0 %v1107_v38  ;;  %2321 = vmatprep.subr.bf16.mxu1 %v3890_v58 }
 0x2a9   :  { %2232 = vmatmul.mubr.bf16.gmra.mxu1 %v1114_v41 }
 0x2aa   :  { %2322 = vmatpush1.bf16.msra.mxu1 %v3888_v31  ;;  %3284 = vmatprep.mubr.msk.bf16.mxu1 %vm2020_vm14, %v1089_v63 }
 0x2ab   :  { %2323 = vmatprep.subr.bf16.mxu1 %v3893_v15 }
 0x2ae   :  { %2291 = vmatmul.mubr.bf16.gmra.mxu0 %v1106_v24  ;;  %2324 = vmatpush1.bf16.msra.mxu1 %v3891_v35 }
 0x2af   :  { %2300 = vmatprep.mubr.bf16.mxu0 %v1117_v54  ;;  %2335 = vmatprep.subr.bf16.mxu1 %v3896_v12 }
 0x2b2   :  { %2336 = vmatpush2.bf16.msra.mxu1 %v3894_v56 }
 0x2b3   :  { %2337 = vmatprep.subr.bf16.mxu1 %v3899_v10 }
 0x2b6   :  { %2301 = vmatmul.mubr.bf16.gmra.mxu0 %v1116_v28  ;;  %2338 = vmatpush2.bf16.msra.mxu1 %v3897_v6 }
 0x2b7   :  { %2339 = vmatprep.subr.bf16.mxu1 %v3902_v59 }
 0x2ba   :  { %2340 = vmatpush2.bf16.msra.mxu1 %v3900_v9 }
 0x2bd   :  { %2342 = vmatmul.mubr.bf16.vlgmr.msra.gmra.mxu1 %v1088_v27 }
 0x2be   :  { %3285 = vmatprep.mubr.msk.bf16.mxu1 %vm2020_vm14, %v1099_v0 }
 0x2c5   :  { %2352 = vmatmul.mubr.bf16.gmra.mxu1 %v1098_v60 }
 0x2c6   :  { %3286 = vmatprep.mubr.msk.bf16.mxu1 %vm2020_vm14, %v1109_v34 }
 0x2cd   :  { %2360 = vmatmul.mubr.bf16.gmra.mxu1 %v1108_v57 }
 0x2ce   :  { %3287 = vmatprep.mubr.msk.bf16.mxu1 %vm2020_vm14, %v1119_v17 }
 0x2d5   :  { %2370 = vmatmul.mubr.bf16.gmra.mxu1 %v1118_v30 }
 0x311   :  { %v2067_v39 = vpop.f32.mrf.mxu1 }
 0x313   :  { %v2069_v21 = vpop.f32.mrf.mxu1 }
 0x315   :  { %v2071_v5 = vpop.f32.mrf.mxu1 }
 0x317   :  { %v2073_v14 = vpop.f32.mrf.mxu1 }
 0x319   :  { %v2077_v23 = vpop.f32.mrf.mxu1 }
 0x31b   :  { %v2079_v13 = vpop.f32.mrf.mxu1 }
 0x31d   :  { %v2081_v42 = vpop.f32.mrf.mxu1  ;;  %v2136_v61 = vpop.f32.mrf.mxu0 }
 0x31e   :  { %v5322_v48 = vadd.f32 %v2136_v61, %v2067_v39 }
 0x31f   :  { %v2082_v20 = vpop.f32.mrf.mxu1  ;;  %v2138_v11 = vpop.f32.mrf.mxu0 }
 0x320   :  { %v5324_v49 = vadd.f32 %v2138_v11, %v2069_v21 }
 0x321   :  { %v2085_v32 = vpop.f32.mrf.mxu1  ;;  %v2140_v25 = vpop.f32.mrf.mxu0 }
 0x322   :  { %v5326_v50 = vadd.f32 %v2140_v25, %v2071_v5 }
 0x323   :  { %v2087_v8 = vpop.f32.mrf.mxu1  ;;  %v2142_v58 = vpop.f32.mrf.mxu0 }
 0x324   :  { %v5328_v4 = vadd.f32 %v2142_v58, %v2073_v14 }
 0x325   :  { %v2089_v53 = vpop.f32.mrf.mxu1 }
 0x327   :  { %v2091_v36 = vpop.f32.mrf.mxu1 }
 0x329   :  { %v2095_v26 = vpop.f32.mrf.mxu1 }
 0x32b   :  { %v2097_v38 = vpop.f32.mrf.mxu1 }
 0x32d   :  { %v2099_v31 = vpop.f32.mrf.mxu1  ;;  %v2146_v45 = vpop.f32.mrf.mxu0 }
 0x32e   :  { %v5330_v40 = vadd.f32 %v2146_v45, %v2077_v23 }
 0x32f   :  { %v2100_v41 = vpop.f32.mrf.mxu1  ;;  %v2148_v15 = vpop.f32.mrf.mxu0 }
 0x330   :  { %v5332_v63 = vadd.f32 %v2148_v15, %v2079_v13 }
 0x331   :  { %v2150_v33 = vpop.f32.mrf.mxu0 }
 0x333   :  { %v2151_v55 = vpop.f32.mrf.mxu0 }
 0x335   :  { %v2154_v35 = vpop.f32.mrf.mxu0 }
 0x336   :  { %v5334_v22 = vadd.f32 %v2154_v35, %v2085_v32 }
 0x337   :  { %v2156_v12 = vpop.f32.mrf.mxu0 }
 0x338   :  { %v5336_v24 = vadd.f32 %v2156_v12, %v2087_v8 }
 0x339   :  { %v2158_v54 = vpop.f32.mrf.mxu0 }
 0x33a   :  { %v5338_v56 = vadd.f32 %v2158_v54, %v2089_v53 }
 0x33b   :  { %v2160_v10 = vpop.f32.mrf.mxu0 }
 0x33c   :  { %v5340_v7 = vadd.f32 %v2160_v10, %v2091_v36 }
 0x33d   :  { %v2164_v6 = vpop.f32.mrf.mxu0 }
 0x33e   :  { %v5342_v59 = vadd.f32 %v2164_v6, %v2095_v26 }
 0x33f   :  { %v2166_v28 = vpop.f32.mrf.mxu0 }
 0x340   :  { %v5344_v9 = vadd.f32 %v2166_v28, %v2097_v38 }
 0x341   :  { %v2168_v43 = vpop.f32.mrf.mxu0 }
 0x343   :  { %v2169_v16 = vpop.f32.mrf.mxu0 }
 0x351   :  { %v2205_v3 = vpop.f32.mrf.mxu1 }
 0x352   :  { %v2206_v53 = vadd.f32 %v2205_v3, %v5322_v48 }
 0x353   :  { %v2207_v19 = vpop.f32.mrf.mxu1 }
 0x354   :  { %v2208_v38 = vadd.f32 %v2207_v19, %v5324_v49 }
 0x355   :  { %v2209_v27 = vpop.f32.mrf.mxu1 }
 0x356   :  { %v2210_v31 = vadd.f32 %v2209_v27, %v5326_v50 }
 0x357   :  { %v2211_v0 = vpop.f32.mrf.mxu1 }
 0x358   :  { %v2212_v15 = vadd.f32 %v2211_v0, %v5328_v4 }
 0x359   :  { %v2215_v46 = vpop.f32.mrf.mxu1 }
 0x35a   :  { %v2216_v54 = vadd.f32 %v2215_v46, %v5330_v40 }
 0x35b   :  { %v2217_v18 = vpop.f32.mrf.mxu1 }
 0x35c   :  { %v2218_v48 = vadd.f32 %v2217_v18, %v5332_v63 }
 0x35d   :  { %v2219_v29 = vpop.f32.mrf.mxu1 }
 0x35e   :  { %v2274_v51 = vpop.f32.mrf.mxu0 }
 0x35f   :  { %v2220_v60 = vpop.f32.mrf.mxu1  ;;  %v2275_v45 = vadd.f32 %v2274_v51, %v2206_v53 }
 0x360   :  { %v2276_v34 = vpop.f32.mrf.mxu0 }
 0x361   :  { %v5346_v1 = vpop.f32.mrf.mxu1  ;;  %v2277_v33 = vadd.f32 %v2276_v34, %v2208_v38 }
 0x362   :  { %v2278_v2 = vpop.f32.mrf.mxu0 }
 0x363   :  { %v5348_v37 = vpop.f32.mrf.mxu1  ;;  %v2279_v55 = vadd.f32 %v2278_v2, %v2210_v31 }
 0x364   :  { %v2280_v57 = vpop.f32.mrf.mxu0  ;;  %v2226_v53 = vadd.f32 %v5348_v37, %v5336_v24 }
 0x365   :  { %v5350_v17 = vpop.f32.mrf.mxu1  ;;  %v2281_v10 = vadd.f32 %v2280_v57, %v2212_v15 }
 0x366   :  { %v2284_v44 = vpop.f32.mrf.mxu0 }
 0x367   :  { %v5352_v30 = vpop.f32.mrf.mxu1  ;;  %v2285_v16 = vadd.f32 %v2284_v44, %v2216_v54 }
 0x368   :  { %v2286_v39 = vpop.f32.mrf.mxu0  ;;  %v2230_v31 = vadd.f32 %v5352_v30, %v5340_v7 }
 0x369   :  { %v5354_v21 = vpop.f32.mrf.mxu1  ;;  %v2287_v19 = vadd.f32 %v2286_v39, %v2218_v48 }
 0x36a   :  { %v2288_v5 = vpop.f32.mrf.mxu0 }
 0x36b   :  { %v5356_v14 = vpop.f32.mrf.mxu1 }
 0x36c   :  { %v2289_v23 = vpop.f32.mrf.mxu0  ;;  %v2236_v24 = vadd.f32 %v5356_v14, %v5344_v9 }
 0x36d   :  { %v2237_v13 = vpop.f32.mrf.mxu1  ;;  %v2224_v23 = vadd.f32 %v5346_v1, %v5334_v22  ;;  %v2234_v1 = vadd.f32 %v5354_v21, %v5342_v59 }
 0x36e   :  { %v2292_v42 = vpop.f32.mrf.mxu0 }
 0x36f   :  { %v2238_v61 = vpop.f32.mrf.mxu1 }
 0x370   :  { %v2294_v20 = vpop.f32.mrf.mxu0 }
 0x372   :  { %v2296_v11 = vpop.f32.mrf.mxu0 }
 0x374   :  { %v2298_v32 = vpop.f32.mrf.mxu0 }
 0x376   :  { %v5358_v25 = vpop.f32.mrf.mxu0 }
 0x378   :  { %v5360_v8 = vpop.f32.mrf.mxu0 }
 0x379   :  { %v2305_v7 = vadd.f32 %v5360_v8, %v2236_v24 }
 0x37a   :  { %v2306_v58 = vpop.f32.mrf.mxu0 }
 0x37c   :  { %v2307_v36 = vpop.f32.mrf.mxu0 }
 0x37d   :  { %v2343_v26 = vpop.f32.mrf.mxu1  ;;  %v2228_v36 = vadd.f32 %v5350_v17, %v5338_v56  ;;  %v2303_v56 = vadd.f32 %v5358_v25, %v2234_v1 }
 0x37e   :  { %v2344_v35 = vadd.f32 %v2343_v26, %v2275_v45  ;;  %v2293_v26 = vadd.f32 %v2292_v42, %v2224_v23  ;;  %v2295_v45 = vadd.f32 %v2294_v20, %v2226_v53  ;;  %v3921_v23 = vld [vmem:[%s5623_s5 + $0xa0] sm:$0xff]   ;;  %v3920_v53 = vld [vmem:[%s5623_s5 + $0x50] sm:$0xff]  }
 0x37f   :  { %v2345_v41 = vpop.f32.mrf.mxu1 }
 0x380   :  { %v2346_v6 = vadd.f32 %v2345_v41, %v2277_v33  ;;  %v2390_v49 = vrot.slane %v2344_v35, 2  ;;  %v2297_v41 = vadd.f32 %v2296_v11, %v2228_v36  ;;  %v2299_v33 = vadd.f32 %v2298_v32, %v2230_v31  ;;  %v3922_v36 = vld [vmem:[%s5623_s5 + $0x10] sm:$0xff]   ;;  %v2471_v31 = vld [vmem:[%s5622_s4] sm:$0x3] }
 0x381   :  { %v2347_v12 = vpop.f32.mrf.mxu1  ;;  %v2480_v1 = vrot.slane %v2471_v31, %v682_v62  ;;  %v3926_v62 = vld [vmem:[%s5623_s5 + $0x8] sm:$0xff]  }
 0x382   :  { %v2348_v28 = vadd.f32 %v2347_v12, %v2279_v55  ;;  %v2393_v29 = vrot.slane %v2346_v6, 2 }
 0x383   :  { %v2349_v43 = vpop.f32.mrf.mxu1 }
 0x384   :  { %v2391_v3 = vrot.slane %v2348_v28, 2  ;;  %v2350_v50 = vadd.f32 %v2349_v43, %v2281_v10 }
 0x385   :  { %v2353_v27 = vpop.f32.mrf.mxu1 }
 0x386   :  { %v2394_v4 = vrot.slane %v2350_v50, 2  ;;  %v2354_v0 = vadd.f32 %v2353_v27, %v2285_v16  ;;  %v2392_v51 = vsel %vm101_vm2, %v2390_v49, %v2391_v3  ;;  %v3907_v27 = vld [vmem:[%s5623_s5 + $0xf8] sm:$0xff]  }
 0x387   :  { %v2355_v60 = vpop.f32.mrf.mxu1  ;;  %v5369_v34 = vmax.f32 %v2344_v35, %v2392_v51  ;;  %3353 = vmatprep.subr.bf16.mxu1 %v3907_v27  ;;  %v3908_v51 = vld [vmem:[%s5623_s5 + $0x68] sm:$0xff]  }
 0x388   :  { %v2396_v40 = vrot.slane %v2354_v0, 2  ;;  %v2356_v46 = vadd.f32 %v2355_v60, %v2287_v19  ;;  %v2395_v2 = vsel %vm101_vm2, %v2393_v29, %v2394_v4  ;;  %v3905_v19 = vld [vmem:[%s5623_s5 + $0x70] sm:$0xff]   ;;  %v3909_v29 = vld [vmem:[%s5623_s5 + $0xb8] sm:$0xff]  }
 0x389   :  { %v2357_v63 = vpop.f32.mrf.mxu1  ;;  %2434 = vrot.lane.b32.xlu0 %v5369_v34, %s3976_s3  ;;  %v5374_v18 = vmax.f32 %v2346_v6, %v2395_v2  ;;  %v3906_v0 = vld [vmem:[%s5623_s5 + $0x30] sm:$0xff]   ;;  %3354 = vmatpush3.bf16.msra.mxu1 %v3909_v29  ;;  %v3912_v2 = vld [vmem:[%s5623_s5 + $0x60] sm:$0xff]  }
 0x38a   :  { %v2398_v57 = vrot.slane %v2356_v46, 2  ;;  %v2397_v44 = vsel %vm101_vm2, %v2391_v3, %v2396_v40  ;;  %v3903_v3 = vld [vmem:[%s5623_s5 + $0x78] sm:$0xff]   ;;  %v3913_v60 = vld [vmem:[%s5623_s5 + $0xb0] sm:$0xff]   ;;  %v3915_v40 = vld [vmem:[%s5623_s5 + $0xe8] sm:$0xff]  }
 0x38b   :  { %v2358_v39 = vpop.f32.mrf.mxu1  ;;  %2436 = vrot.lane.b32.xlu1 %v5374_v18, %s3976_s3  ;;  %v5379_v5 = vmax.f32 %v2348_v28, %v2397_v44  ;;  %3331 = vmatprep.subr.bf16.mxu0 %v3903_v3  ;;  %v3910_v46 = vld [vmem:[%s5623_s5 + $0x28] sm:$0xff]   ;;  %v3914_v44 = vld [vmem:[%s5623_s5 + $0x20] sm:$0xff]  }
 0x38c   :  { %v2399_v13 = vsel %vm101_vm2, %v2394_v4, %v2398_v57  ;;  %v3911_v4 = vld [vmem:[%s5623_s5 + $0xf0] sm:$0xff]   ;;  %v3917_v63 = vld [vmem:[%s5623_s5 + $0xa8] sm:$0xff]   ;;  %v3919_v57 = vld [vmem:[%s5623_s5 + $0xe0] sm:$0xff]  }
 0x38d   :  { %v2361_v61 = vpop.f32.mrf.mxu1  ;;  %v5384_v58 = vmax.f32 %v2350_v50, %v2399_v13  ;;  %v3904_v50 = vld [vmem:[%s5623_s5 + $0x38] sm:$0xff]   ;;  %3355 = vmatprep.subr.bf16.mxu1 %v3911_v4 }
 0x38e   :  { %v2362_v15 = vadd.f32 %v2361_v61, %v2293_v26  ;;  %3332 = vmatpush3.bf16.msra.mxu0 %v3904_v50  ;;  %3356 = vmatpush3.bf16.msra.mxu1 %v3913_v60  ;;  %v3916_v39 = vld [vmem:[%s5623_s5 + $0x58] sm:$0xff]  }
 0x38f   :  { %v2363_v38 = vpop.f32.mrf.mxu1  ;;  %3333 = vmatprep.subr.bf16.mxu0 %v3905_v19  ;;  %3357 = vmatprep.subr.bf16.mxu1 %v3915_v40  ;;  %v3923_v13 = vld [vmem:[%s5623_s5 + $0xd8] sm:$0xff]   ;;  %v3932_v40 = vld [vmem:[%s5623_s5 + $0x88] sm:$0xff]  }
 0x390   :  { %v2364_v55 = vadd.f32 %v2363_v38, %v2295_v45  ;;  %v2400_v17 = vrot.slane %v2362_v15, 2  ;;  %v3918_v61 = vld [vmem:[%s5623_s5 + $0x18] sm:$0xff]  }
 0x391   :  { %v2365_v22 = vpop.f32.mrf.mxu1 }
 0x392   :  { %v2366_v35 = vadd.f32 %v2365_v22, %v2297_v41  ;;  %v2403_v20 = vrot.slane %v2364_v55, 2  ;;  %3334 = vmatpush3.bf16.msra.mxu0 %v3906_v0  ;;  %3358 = vmatpush3.bf16.msra.mxu1 %v3917_v63  ;;  %v2476_v41 = vrot.slane %v2471_v31, %v678_v52  ;;  %v3924_v52 = vld [vmem:[%s5623_s5 + $0x48] sm:$0xff]  }
 0x393   :  { %v2367_v37 = vpop.f32.mrf.mxu1  ;;  %3335 = vmatprep.subr.bf16.mxu0 %v3908_v51  ;;  %3359 = vmatprep.subr.bf16.mxu1 %v3919_v57  ;;  %v3978_v57 = vmov 0.0  }
 0x394   :  { %v2401_v42 = vrot.slane %v2366_v35, 2  ;;  %v2368_v12 = vadd.f32 %v2367_v37, %v2299_v33 }
 0x395   :  { %v2371_v30 = vpop.f32.mrf.mxu1 }
 0x396   :  { %v2404_v11 = vrot.slane %v2368_v12, 2  ;;  %v2372_v54 = vadd.f32 %v2371_v30, %v2303_v56  ;;  %v2402_v59 = vsel %vm101_vm2, %v2400_v17, %v2401_v42  ;;  %3336 = vmatpush3.bf16.msra.mxu0 %v3910_v46  ;;  %3360 = vmatpush3.bf16.msra.mxu1 %v3921_v23 }
 0x397   :  { %v2373_v21 = vpop.f32.mrf.mxu1  ;;  %v5399_v32 = vmax.f32 %v2362_v15, %v2402_v59  ;;  %3337 = vmatprep.subr.bf16.mxu0 %v3912_v2  ;;  %3361 = vmatprep.subr.bf16.mxu1 %v3923_v13  ;;  %v3928_v59 = vld [vmem:[%s5623_s5 + $0x40] sm:$0xff]  }
 0x398   :  { %v2406_v10 = vrot.slane %v2372_v54, 2  ;;  %v2374_v6 = vadd.f32 %v2373_v21, %v2305_v7  ;;  %v2405_v9 = vsel %vm101_vm2, %v2403_v20, %v2404_v11  ;;  %v3929_v21 = vld [vmem:[%s5623_s5 + $0x90] sm:$0xff]  }
 0x399   :  { %v2375_v14 = vpop.f32.mrf.mxu1  ;;  %2442 = vrot.lane.b32.xlu0 %v5399_v32, %s3976_s3  ;;  %v5404_v25 = vmax.f32 %v2364_v55, %v2405_v9 }
 0x39a   :  { %v2408_v8 = vrot.slane %v2374_v6, 2  ;;  %v2407_v28 = vsel %vm101_vm2, %v2401_v42, %v2406_v10  ;;  %3338 = vmatpush3.bf16.msra.mxu0 %v3914_v44  ;;  %v3927_v42 = vld [vmem:[%s5623_s5 + $0xd0] sm:$0xff]   ;;  %3362 = vmatpush3.bf16.msra.mxu1 %v3925_v47 }
 0x39b   :  { %v2376_v48 = vpop.f32.mrf.mxu1  ;;  %2444 = vrot.lane.b32.xlu1 %v5404_v25, %s3976_s3  ;;  %v5409_v43 = vmax.f32 %v2366_v35, %v2407_v28  ;;  %3339 = vmatprep.subr.bf16.mxu0 %v3916_v39 }
 0x39c   :  { %v2409_v16 = vsel %vm101_vm2, %v2404_v11, %v2408_v8  ;;  %3363 = vmatprep.subr.bf16.mxu1 %v3927_v42  ;;  %vm2526_vm2 = vcmask 293888  }
 0x39d   :  { %2446 = vrot.lane.b32.xlu0 %v5409_v43, %s3976_s3  ;;  %v5414_v49 = vmax.f32 %v2368_v12, %v2409_v16 }
 0x39e   :  { %3340 = vmatpush3.bf16.msra.mxu0 %v3918_v61  ;;  %3364 = vmatpush3.bf16.msra.mxu1 %v3929_v21 }
 0x39f   :  { %2448 = vrot.lane.b32.xlu1 %v5414_v49, %s3976_s3  ;;  %3341 = vmatprep.subr.bf16.mxu0 %v3920_v53 }
 0x3a1   :  { %2438 = vrot.lane.b32.xlu0 %v5379_v5, %s3976_s3 }
 0x3a2   :  { %3342 = vmatpush3.bf16.msra.mxu0 %v3922_v36 }
 0x3a3   :  { %2440 = vrot.lane.b32.xlu1 %v5384_v58, %s3976_s3  ;;  %3343 = vmatprep.subr.bf16.mxu0 %v3924_v52 }
 0x3a6   :  { %3344 = vmatpush3.bf16.msra.mxu0 %v3926_v62 }
 0x3a7   :  { %3345 = vmatprep.subr.bf16.mxu0 %v3928_v59 }
 0x3fb   :  { %v2435_v38 = vpop.permute.xlu0 %2434 }
 0x3fd   :  { %v2437_v26 = vpop.permute.xlu1 %2436 }
 0x3fe   :  { %v2451_v45 = vsel %vm2450_vm15, %v2435_v38, %v2437_v26  ;;  %v2464_v33 = vmax.f32 %v5374_v18, %v2437_v26 }
 0x3ff   :  { %v2463_v15 = vmax.f32 %v5369_v34, %v2451_v45 }
 0x400   :  { %v5507_v34 = vadd.f32 %v2480_v1, %v2464_v33 }
 0x401   :  { %v2483_v55 = vadd.f32 %v2476_v41, %v2463_v15 }
 0x402   :  { %v2492_v9 = vmax.f32 %v5507_v34, 0.0 }
 0x403   :  { %v2491_v12 = vmax.f32 %v2483_v55, 0.0 }
 0x404   :  { %v2502_v63 = vrot.slane %v2492_v9, 4 }
 0x40b   :  { %v2443_v22 = vpop.permute.xlu0 %2442 }
 0x40d   :  { %v2445_v35 = vpop.permute.xlu1 %2444 }
 0x40e   :  { %v2453_v24 = vsel %vm2450_vm15, %v2443_v22, %v2445_v35  ;;  %v2468_v37 = vmax.f32 %v5404_v25, %v2445_v35  ;;  %v3931_v25 = vld [vmem:[%s5623_s5 + $0xc8] sm:$0xff]  }
 0x40f   :  { %v2467_v56 = vmax.f32 %v5399_v32, %v2453_v24  ;;  %v2447_v17 = vpop.permute.xlu0 %2446  ;;  %v3930_v32 = vld [vmem:[%s5623_s5] sm:$0xff]   ;;  %3365 = vmatprep.subr.bf16.mxu1 %v3931_v25 }
 0x410   :  { %v5509_v18 = vadd.f32 %v2480_v1, %v2468_v37  ;;  %3346 = vmatpush3.bf16.msra.mxu0 %v3930_v32  ;;  %3366 = vmatpush3.bf16.msra.mxu1 %v3932_v40 }
 0x411   :  { %v2487_v7 = vadd.f32 %v2476_v41, %v2467_v56  ;;  %v2449_v30 = vpop.permute.xlu1 %2448  ;;  %3384 = vmatprep.subr.bf16.mxu0 %v3978_v57 }
 0x412   :  { %v2496_v20 = vmax.f32 %v5509_v18, 0.0  ;;  %v2454_v11 = vsel %vm2450_vm15, %v2447_v17, %v2449_v30  ;;  %v2470_v54 = vmax.f32 %v5414_v49, %v2449_v30  ;;  %v2501_v49 = vrot.slane %v2491_v12, 4  ;;  %v3933_v18 = vld [vmem:[%s5623_s5 + $0x110] sm:$0xff]  }
 0x413   :  { %v2495_v10 = vmax.f32 %v2487_v7, 0.0  ;;  %v2469_v6 = vmax.f32 %v5409_v43, %v2454_v11  ;;  %v2439_v48 = vpop.permute.xlu0 %2438 }
 0x414   :  { %v2490_v14 = vadd.f32 %v2480_v1, %v2470_v54  ;;  %v2536_v27 = vrot.slane %v2496_v20, 4 }
 0x415   :  { %v2567_v8 = vrot.slane %v2495_v10, 7  ;;  %v2489_v28 = vadd.f32 %v2476_v41, %v2469_v6  ;;  %v2441_v16 = vpop.permute.xlu1 %2440  ;;  %v2535_v3 = vrot.slane %v2495_v10, 4  ;;  %v3936_v6 = vld [vmem:[%s5623_s5 + $0x108] sm:$0xff]  }
 0x416   :  { %v2498_v50 = vmax.f32 %v2490_v14, 0.0  ;;  %v2452_v19 = vsel %vm2450_vm15, %v2439_v48, %v2441_v16  ;;  %v2466_v43 = vmax.f32 %v5384_v58, %v2441_v16  ;;  %v3934_v58 = vld [vmem:[%s5623_s5 + $0xc0] sm:$0xff]   ;;  %v3636_v23 = vpack.i.bf16 %v2502_v63, %v2536_v27 }
 0x417   :  { %v5536_v29 = vsel %vm2577_vm0, %v2491_v12, %v2567_v8  ;;  %v2497_v4 = vmax.f32 %v2489_v28, 0.0  ;;  %v2465_v0 = vmax.f32 %v5379_v5, %v2452_v19  ;;  %v3631_v51 = vpack.i.bf16 %v2501_v49, %v2535_v3  ;;  %v3935_v5 = vld [vmem:[%s5623_s5 + $0x80] sm:$0xff]   ;;  %3367 = vmatprep.subr.bf16.mxu1 %v3934_v58 }
 0x418   :  { %v2486_v60 = vadd.f32 %v2480_v1, %v2466_v43  ;;  %3368 = vmatpush3.bf16.msra.mxu1 %v3935_v5  ;;  %v2554_v36 = vrot.slane %v2498_v50, 4  ;;  %v2583_v7 = vpack.c.bf16 %v5536_v29, %v5536_v29  ;;  %v3937_v19 = vld [vmem:[%s5623_s5 + $0x100] sm:$0xff]   ;;  %v3938_v29 = vld [vmem:[%s5625_s7 + $0x18] ss:$0 sps:$4 sm:$0x11]  }
 0x419   :  { %v2485_v46 = vadd.f32 %v2476_v41, %v2465_v0  ;;  %3632 = vrot.lane.b32.xlu0 %v3631_v51, %s3977_s0  ;;  %v3646_v2 = vpack.i.bf16 %v2498_v50, %v2497_v4  ;;  %v2553_v13 = vrot.slane %v2497_v4, 4  ;;  %3394 = vmatprep.subr.bf16.mxu1 %v3978_v57  ;;  %v3040_v4 = vsel %vm2577_vm0, %v3938_v29, 0  ;;  %v3939_v0 = vld [vmem:[%s5625_s7 + $0x10] sm:$0xff]   ;;  %v3940_v51 = vld [vmem:[%s5625_s7 + $0x8] sm:$0xff]   ;;  %v3288_v5 = vld [vmem:[%s5624_s6] ss:$0 sm:$0xff] }
 0x41a   :  { %v2494_v39 = vmax.f32 %v2486_v60, 0.0  ;;  %v3941_v60 = vld [vmem:[%s5625_s7] sm:$0xff]   ;;  %s3982_s6 = smov [#allocation2]  }
 0x41b   :  { %v2493_v44 = vmax.f32 %v2485_v46, 0.0  ;;  %3647 = vrot.lane.b32.xlu1 %v3646_v2, %s3979_s29 }
 0x41c   :  { %v2521_v26 = vrot.slane %v2494_v39, 4 }
 0x41d   :  { %3637 = vrot.lane.b32.xlu0 %v3636_v23, %s3977_s0  ;;  %v3641_v61 = vpack.i.bf16 %v2494_v39, %v2493_v44  ;;  %v2520_v53 = vrot.slane %v2493_v44, 4 }
 0x41f   :  { %2555 = vrot.lane.b32.xlu1 %v2553_v13, %s3980_s30 }
 0x421   :  { %3642 = vrot.lane.b32.xlu0 %v3641_v61, %s3979_s29 }
 0x423   :  { %2522 = vrot.lane.b32.xlu1 %v2520_v53, %s3980_s30 }
 0x425   :  { %2557 = vrot.lane.b32.xlu0 %v2554_v36, %s3980_s30 }
 0x427   :  { %2524 = vrot.lane.b32.xlu1 %v2521_v26, %s3980_s30 }
 0x48b   :  { %v3633_v38 = vpop.permute.xlu0 %3632 }
 0x48c   :  { %v3635_v31 = vunpack.i.h.bf16 %v3633_v38  ;;  %v3634_v45 = vunpack.i.l.bf16 %v3633_v38 }
 0x48d   :  { %v3648_v41 = vpop.permute.xlu1 %3647 }
 0x48e   :  { %v2561_v15 = vsel %vm398_vm8, %v2496_v20, %v3634_v45  ;;  %v3650_v22 = vunpack.i.h.bf16 %v3648_v41  ;;  %v3649_v1 = vunpack.i.l.bf16 %v3648_v41  ;;  %v2530_v35 = vsel %vm398_vm8, %v2492_v9, %v3635_v31 }
 0x48f   :  { %v2568_v33 = vrot.slane %v2561_v15, 7  ;;  %v3638_v55 = vpop.permute.xlu0 %3637 }
 0x490   :  { %v3639_v24 = vunpack.i.l.bf16 %v3638_v55  ;;  %v2550_v37 = vsel %vm2516_vm1, %v3649_v1, %v3650_v22  ;;  %v3640_v56 = vunpack.i.h.bf16 %v3638_v55  ;;  %v3325_v22 = vld [vmem:[%s5626_s8] ss:$0 sm:$0xff]  ;;  %s3102_s8 = sshll.u32 %s3982_s6, 4  ;;  %s3103_s8 = int_to_ptr.vmem [resolvable:$true] %s3102_s8 }
 0x491   :  { %v2556_v17 = vpop.permute.xlu1 %2555  ;;  %v2579_v52 = vsel %vm2577_vm0, %v2530_v35, %v2568_v33  ;;  %s3946_s20 = scalar_lea.vmem %s3103_s8, 32  ;;  %p3951_p1 = scmp.lt.s32.totalorder %s3103_s8, %s3103_s8 }
 0x492   :  { %v2541_v47 = vsel %vm398_vm8, %v3634_v45, %v3639_v24  ;;  %v2584_v62 = vpack.c.bf16 %v2579_v52, %v2579_v52  ;;  %v2563_v34 = vsel %vm2526_vm2, %v2550_v37, %v2556_v17  ;;  %v2507_v54 = vsel %vm398_vm8, %v3635_v31, %v3640_v56  ;;  %p3947_p0 = scmp.ne.s32.totalorder %s3103_s8, %s3946_s20  ;;  %p3952_p2 = scmp.lt.s32.totalorder %s3946_s20, %s3946_s20 }
 0x493   :  { %v2562_v42 = vsel %vm2516_vm1, %v2541_v47, %v3649_v1  ;;  %v3643_v12 = vpop.permute.xlu0 %3642  ;;  %v2570_v21 = vrot.slane %v2563_v34, 7 }
 0x494   :  { %v2569_v30 = vrot.slane %v2562_v42, 7  ;;  %v3645_v20 = vunpack.i.h.bf16 %v3643_v12  ;;  %v3644_v11 = vunpack.i.l.bf16 %v3643_v12  ;;  %2910 = vmatprep.mubr.bf16.mxu0 %v2584_v62  ;;  %p3953_p3 = por %p3952_p2, %p3951_p1 }
 0x495   :  { %v2523_v59 = vpop.permute.xlu1 %2522  ;;  %2911 = vmatmul.mubr.bf16.vlgmr.msra.gmra.mxu0 %v2583_v7 }
 0x496   :  { %v2531_v32 = vsel %vm2516_vm1, %v2507_v54, %v3644_v11  ;;  %v2517_v10 = vsel %vm2516_vm1, %v3644_v11, %v3645_v20  ;;  %3385 = vmatpush3.bf16.msra.mxu0 %v3933_v18  ;;  %3390 = vmatprep.mubr.msk.bf16.mxu0 %vm3981_vm3, %v3978_v57  ;;  %p3954_p4 = pnand %p3953_p3, %p3947_p0 }
 0x497   :  { %v2580_v9 = vsel %vm2577_vm0, %v2531_v32, %v2569_v30  ;;  %v2532_v14 = vsel %vm2526_vm2, %v2517_v10, %v2523_v59  ;;  %v2558_v25 = vpop.permute.xlu0 %2557  ;;  %3386 = vmatprep.subr.bf16.mxu0 %v3978_v57 }
 0x498   :  { %v2581_v8 = vsel %vm2577_vm0, %v2532_v14, %v2570_v21  ;;  %v2559_v28 = vsel %vm2526_vm2, %v2556_v17, %v2558_v25  ;;  %v2585_v3 = vpack.c.bf16 %v2580_v9, %v2580_v9 }
 0x499   :  { %v2571_v48 = vrot.slane %v2559_v28, 7  ;;  %v2525_v16 = vpop.permute.xlu1 %2524  ;;  %v2586_v49 = vpack.c.bf16 %v2581_v8, %v2581_v8 }
 0x49a   :  { %v2527_v50 = vsel %vm2526_vm2, %v2523_v59, %v2525_v16  ;;  %3387 = vmatpush3.bf16.msra.mxu0 %v3936_v6 }
 0x49b   :  { %2950 = vmatprep.mubr.bf16.mxu1 %v2586_v49  ;;  %3388 = vmatprep.subr.bf16.mxu0 %v3978_v57  ;;  %v2582_v43 = vsel %vm2577_vm0, %v2527_v50, %v2571_v48 }
 0x49c   :  { %2951 = vmatmul.mubr.bf16.vlgmr.msra.gmra.mxu1 %v2585_v3  ;;  %v2587_v27 = vpack.c.bf16 %v2582_v43, %v2582_v43 }
 0x49d   :  { %3402 = vmatprep.mubr.msk.bf16.mxu1 %vm3981_vm3, %v3978_v57  ;;  %3395 = vmatpush3.bf16.msra.mxu1 %v3040_v4 }
 0x49e   :  { %3389 = vmatpush3.bf16.msra.mxu0 %v3937_v19  ;;  %3396 = vmatprep.subr.bf16.mxu1 %v3978_v57 }
 0x4a1   :  { %3391 = vmatmul.mubr.msk.bf16.vlgmr.msra.gmra.mxu0 %vm2020_vm14, %v2587_v27  ;;  %3397 = vmatpush3.bf16.msra.mxu1 %v3939_v0 }
 0x4a2   :  { %3398 = vmatprep.subr.bf16.mxu1 %v3978_v57 }
 0x4a5   :  { %3399 = vmatpush3.bf16.msra.mxu1 %v3940_v51 }
 0x4a6   :  { %3400 = vmatprep.subr.bf16.mxu1 %v3978_v57 }
 0x4a9   :  { %3401 = vmatpush3.bf16.msra.mxu1 %v3941_v60 }
 0x555   :  { %v3347_v40 = vpop.f32.mrf.mxu0 }
 0x557   :  { %v3348_v58 = vpop.f32.mrf.mxu0 }
 0x558   :  { %v3349_v2 = vadd.f32 %v3348_v58, %v3347_v40 }
 0x559   :  { %v3350_v46 = vpop.f32.mrf.mxu0 }
 0x55a   :  { %v2913_v23 = vadd.f32 %v3349_v2, %v3288_v5 }
 0x55b   :  { %v3351_v63 = vpop.f32.mrf.mxu0 }
 0x55c   :  { %v3369_v44 = vpop.f32.mrf.mxu1 }
 0x55e   :  { %v3370_v39 = vpop.f32.mrf.mxu1 }
 0x55f   :  { %v3371_v13 = vadd.f32 %v3370_v39, %v3369_v44 }
 0x560   :  { %v3372_v61 = vpop.f32.mrf.mxu1 }
 0x561   :  { %v2953_v53 = vadd.f32 %v3371_v13, %v2913_v23  ;;  %v2992_v36 = vpop.f32.mrf.mxu0 }
 0x562   :  { %v3373_v26 = vpop.f32.mrf.mxu1 }
 0x563   :  { %v2993_v38 = vadd.f32 %v2992_v36, %v2953_v53  ;;  %v3392_v57 = vpop.f32.mrf.mxu0 }
 0x565   :  { %v2998_v31 = vmax.f32 %v2993_v38, 0.0  ;;  %v2995_v45 = vpop.f32.mrf.mxu0 }
 0x567   :  { %v2999_v41 = vpack.c.bf16 %v2998_v31, %v2998_v31  ;;  %v3393_v15 = vpop.f32.mrf.mxu0 }
 0x569   :  { %3403 = vmatmul.mubr.msk.bf16.vlgmr.msra.gmra.mxu1 %vm3035_vm4, %v2999_v41 }
 0x629   :  { %v3076_v1 = vpop.f32.mrf.mxu1 }
 0x62a   :  { %v3077_v33 = vadd.f32 %v3325_v22, %v3076_v1 }
 0x62b   :  { %v3404_v55 = vpop.f32.mrf.mxu1 }
 0x62c   :  { %v3083_v35 = vsel %vm3082_vm5, %v3077_v33, -inf }
 0x62d   :  { %3084 = vmax.xlane.f32.xlu0 %v3083_v35  ;;  %v3079_v24 = vpop.f32.mrf.mxu1 }
 0x62f   :  { %v3405_v37 = vpop.f32.mrf.mxu1 }
 0x6b6   :  { %v3085_v56 = vpop.xlane.xlu0 %3084 }
 0x6b7   :  { %v3086_v17 = vsub.f32 %v3077_v33, %v3085_v56 }
 0x6b9   :  { %v3087_v52 = vmul.f32 1.442695, %v3086_v17 }
 0x6bb   :  { %3942 = vpow2.f32 %v3087_v52 }
 0x6c8   :  { %v3943_v47 = vpop.eup %3942 }
 0x6c9   :  { %v3089_v62 = vsel %vm3082_vm5, %v3943_v47, 0.0 }
 0x6ca   :  { %3090 = vadd.xlane.f32.xlu1 %v3089_v62 }
 0x753   :  { %v3091_v18 = vpop.xlane.xlu1 %3090 }
 0x754   :  { %3944 = vlog2.f32 %v3091_v18 }
 0x761   :  { %v3945_v42 = vpop.eup %3944 }
 0x762   :  { %v3093_v34 = vmul.f32 0.6931472, %v3945_v42 }
 0x764   :  { %v3094_v12 = vsub.f32 %v3086_v17, %v3093_v34 }
 0x766   :  { %3095 = vst.msk [vmem:[#allocation2] sm:$0x3] %vm3082_vm5, %v3094_v12 }
 0x767   :  { %3957 = shalt.err (!%p3954_p4)
}
 0x768   :  { %3105 = dma.vmem_to_hbm [thread:$0]  %s3103_s8, 32, %s5627_s9, [#allocation3]  }
 0x769   :  { %3966 = dma.done.wait [#allocation3], 32  }
 0x76a   :  { %3967 = vsyncadd [#allocation3], 4294967264 }
 0x76b   :  { %3109 = vsyncpa [#allocation3], 1 }

</bundles_post_ra>
